<compile_context>
chip_gen: v5e
topology: v5e:2x2
jax: 0.10.0
libtpu: 0.0.40
codegen_flags: <defaults>
</compile_context>

<pallas_src>
import math

import numpy as np
import jax
import jax.numpy as jnp
from jax.experimental import pallas as pl
from jax.experimental.pallas import tpu as pltpu

# ---------------- model hyperparameters (small, consistent with the module) ----------------
D_MODEL = 32
N_LAYERS = 2
HEADS = 4                      # `attention` argument == number of heads
DK = D_MODEL // HEADS          # 8
WINDOW = 8                     # `windows` argument == sequence length
D_FF = 64
N_CLASSES = 5
OUT_PAD = 128                  # lane-dense padded output width (sliced back to 5 in JAX)
EPS = 1e-6
BATCH = 2

W_ROWS = 3 * D_MODEL + D_FF    # 160 rows in the packed per-layer weight slab
W_COLS = 3 * D_MODEL           # 96 lanes
V_ROWS = 8                     # packed per-layer vector slab rows
FIN_ROWS = 40                  # final slab rows (W_out | b_out | norm alpha | norm bias)
TARGET_ROWS = 256              # target B*S rows per grid block (review: >=128-256)


# ---------------- shared in-kernel helpers ----------------
def _norm(x, alpha, bias):
    # torch: alpha * (x - x.mean(-1)) / (x.std(-1, unbiased=True) + eps) + bias
    mean = jnp.mean(x, axis=-1, keepdims=True)
    var = jnp.sum((x - mean) ** 2, axis=-1, keepdims=True) * (1.0 / (x.shape[-1] - 1))
    # eps is added to std (not variance) to match torch; reciprocal goes to the EUP slot.
    inv = pl.reciprocal(jnp.sqrt(var) + EPS, approx=True)
    return alpha * (x - mean) * inv + bias


# -------- single fused kernel: PE + N encoder layers + final norm + out linear (one block) --
def transformer_kernel(src_ref, pe_ref, w_ref, v_ref, fin_ref, out_ref):
    Bb, S, D = src_ref.shape
    BS = Bb * S
    G = HEADS * Bb                               # (head, batch) folded into one batch dim

    # ---- positional encoding; fold batch into rows -> (B*S, D) ----
    x = (src_ref[...] * jnp.float32(math.sqrt(D_MODEL)) + pe_ref[...]).reshape(BS, D)

    inv_sqrt_dk = jnp.float32(1.0 / math.sqrt(DK))

    # Static, unrolled layer loop.
    # TODO(synk): switch to lax.fori_loop + dynamic w_ref[l]/v_ref[l] if N_LAYERS grows past ~4.
    for l in range(N_LAYERS):
        vl = v_ref[l]                               # (8, 96) packed vector params
        n1a, n1b = vl[0:1, 0:D], vl[1:2, 0:D]
        n2a, n2b = vl[2:3, 0:D], vl[3:4, 0:D]
        b_qkv = vl[4:5, :]                          # (1, 96) = [bq | bk | bv]
        b_o = vl[5:6, 0:D]
        b_1 = vl[6:7, 0:D_FF]
        b_2 = vl[7:8, 0:D]

        w_qkv = w_ref[l, 0:D, :]                    # (32, 96) = [wq | wk | wv]
        w_o = w_ref[l, D:2 * D, 0:D]                # (32, 32)
        w_1 = w_ref[l, 2 * D:3 * D, 0:D_FF]         # (32, 64)
        w_2 = w_ref[l, 3 * D:3 * D + D_FF, 0:D]     # (64, 32)

        # ---- self-attention sublayer (pre-norm), fused QKV projection ----
        x2 = _norm(x, n1a, n1b)
        qkv = jnp.dot(x2, w_qkv, preferred_element_type=jnp.float32) + b_qkv   # (BS, 96)

        # Split heads once and fold (head, batch) into a single leading batch dim G, so the
        # whole attention is TWO batched einsums + ONE softmax (no per-head matmul loop).
        def heads(base):
            return jnp.concatenate(
                [qkv[:, base + h * DK: base + (h + 1) * DK].reshape(Bb, S, DK)
                 for h in range(HEADS)], axis=0)                                # (G, S, DK)

        q = heads(0)
        k = heads(D)
        v = heads(2 * D)

        s = jnp.einsum('gqd,gkd->gqk', q, k,
                       preferred_element_type=jnp.float32) * inv_sqrt_dk        # (G, S, S)
        s = s - jnp.max(s, axis=-1, keepdims=True)
        p = jnp.exp(s)
        p = p * pl.reciprocal(jnp.sum(p, axis=-1, keepdims=True), approx=True)
        ctx = jnp.einsum('gqk,gkd->gqd', p, v,
                         preferred_element_type=jnp.float32)                     # (G, S, DK)

        # Re-assemble heads along lanes -> (BS, D), then a single output projection.
        ctx = jnp.concatenate(
            [ctx[h * Bb:(h + 1) * Bb].reshape(BS, DK) for h in range(HEADS)], axis=-1)
        x = x + jnp.dot(ctx, w_o, preferred_element_type=jnp.float32) + b_o

        # ---- feed-forward sublayer (pre-norm) ----
        x2 = _norm(x, n2a, n2b)
        h1 = jnp.maximum(jnp.dot(x2, w_1, preferred_element_type=jnp.float32) + b_1, 0.0)
        x = x + jnp.dot(h1, w_2, preferred_element_type=jnp.float32) + b_2

    # ---- final encoder norm + output linear (padded to 128 lanes: lane-dense store) ----
    w_out = fin_ref[0:D, :]                 # (32, 128), cols >= 5 are zero
    b_out = fin_ref[D:D + 1, :]             # (1, 128)
    na = fin_ref[D + 1:D + 2, 0:D]
    nb = fin_ref[D + 2:D + 3, 0:D]
    xf = _norm(x, na, nb)
    out = jnp.dot(xf, w_out, preferred_element_type=jnp.float32) + b_out   # (BS, 128)
    out_ref[...] = out.reshape(Bb, S, OUT_PAD)


# ---------------- wrapper: one pallas_call, grid over batch, params VMEM-resident -----------
@jax.jit
def transformer_forward(src, params):
    B, S, D = src.shape
    # Target >= TARGET_ROWS rows of B*S per block when batch is large; for the tiny test
    # case this collapses to a single grid step.
    block_b = min(B, max(1, TARGET_ROWS // S))
    pad = (-B) % block_b
    if pad:
        src = jnp.concatenate([src, jnp.zeros((pad, S, D), src.dtype)], axis=0)
    bp = B + pad
    grid = (bp // block_b,)

    out_pad = pl.pallas_call(
        transformer_kernel,
        out_shape=jax.ShapeDtypeStruct((bp, S, OUT_PAD), jnp.float32),
        grid=grid,
        in_specs=[
            pl.BlockSpec((block_b, S, D), lambda b: (b, 0, 0)),                  # activations
            pl.BlockSpec((WINDOW, D_MODEL), lambda b: (0, 0)),                   # PE (resident)
            pl.BlockSpec((N_LAYERS, W_ROWS, W_COLS), lambda b: (0, 0, 0)),       # W  (resident)
            pl.BlockSpec((N_LAYERS, V_ROWS, W_COLS), lambda b: (0, 0, 0)),       # V  (resident)
            pl.BlockSpec((FIN_ROWS, OUT_PAD), lambda b: (0, 0)),                 # FIN (resident)
        ],
        out_specs=pl.BlockSpec((block_b, S, OUT_PAD), lambda b: (b, 0, 0)),
        compiler_params=pltpu.CompilerParams(
            dimension_semantics=("parallel",)),   # v7x: shard the batch grid across both TCs
    )(src, params["pe"], params["W"], params["V"], params["FIN"])
    return out_pad[:B, :, :N_CLASSES]


# ---------------- deterministic parameter setup (synthetic, no checkpoints) ----------------
def make_positional_encoding(seq_len, d_model):
    # SamLynnEvans-style PE table
    pe = np.zeros((seq_len, d_model), dtype=np.float32)
    for pos in range(seq_len):
        for i in range(0, d_model, 2):
            pe[pos, i] = math.sin(pos / (10000 ** ((2 * i) / d_model)))
            pe[pos, i + 1] = math.cos(pos / (10000 ** ((2 * (i + 1)) / d_model)))
    return jnp.asarray(pe)


def init_params(key):
    D, F = D_MODEL, D_FF
    n_keys = N_LAYERS * 12 + 2
    kit = iter(jax.random.split(key, n_keys))

    def linear_w(in_f, out_f):
        # PyTorch nn.Linear weight is (out, in); store transposed (in, out) for x @ W.
        w = jax.random.normal(next(kit), (out_f, in_f), dtype=jnp.float32) * 0.02
        return w.T

    def linear_b(out_f, in_f):
        bound = 1.0 / math.sqrt(in_f)
        return jax.random.uniform(next(kit), (out_f,), jnp.float32, -bound, bound)

    w_slabs, v_slabs = [], []
    for _ in range(N_LAYERS):
        wq, bq = linear_w(D, D), linear_b(D, D)
        wk, bk = linear_w(D, D), linear_b(D, D)
        wv, bv = linear_w(D, D), linear_b(D, D)
        wo, bo = linear_w(D, D), linear_b(D, D)
        w1, b1 = linear_w(D, F), linear_b(F, D)
        w2, b2 = linear_w(F, D), linear_b(D, F)

        # packed weight slab (160, 96): rows [qkv | wo | w1 | w2], zero-padded lanes
        W = jnp.zeros((W_ROWS, W_COLS), jnp.float32)
        W = W.at[0:D, :].set(jnp.concatenate([wq, wk, wv], axis=1))
        W = W.at[D:2 * D, 0:D].set(wo)
        W = W.at[2 * D:3 * D, 0:F].set(w1)
        W = W.at[3 * D:3 * D + F, 0:D].set(w2)
        w_slabs.append(W)

        # packed vector slab (8, 96): norm params + all biases, one row each
        V = jnp.zeros((V_ROWS, W_COLS), jnp.float32)
        V = V.at[0, 0:D].set(1.0)                         # norm_1 alpha (torch init: ones)
        # row 1: norm_1 bias = zeros
        V = V.at[2, 0:D].set(1.0)                         # norm_2 alpha
        # row 3: norm_2 bias = zeros
        V = V.at[4, :].set(jnp.concatenate([bq, bk, bv]))
        V = V.at[5, 0:D].set(bo)
        V = V.at[6, 0:F].set(b1)
        V = V.at[7, 0:D].set(b2)
        v_slabs.append(V)

    # final slab (40, 128): rows 0:32 = W_out padded, row 32 = b_out, rows 33/34 = norm a/b
    wout = linear_w(D, N_CLASSES)                         # (32, 5)
    bout = linear_b(N_CLASSES, D)
    FIN = jnp.zeros((FIN_ROWS, OUT_PAD), jnp.float32)
    FIN = FIN.at[0:D, 0:N_CLASSES].set(wout)
    FIN = FIN.at[D, 0:N_CLASSES].set(bout)
    FIN = FIN.at[D + 1, 0:D].set(1.0)                     # final norm alpha
    # row D + 2: final norm bias = zeros

    return dict(pe=make_positional_encoding(WINDOW, D_MODEL),
                W=jnp.stack(w_slabs), V=jnp.stack(v_slabs), FIN=FIN)


if __name__ == "__main__":
    key = jax.random.PRNGKey(0)
    k_src, k_par = jax.random.split(key)
    src = jax.random.normal(k_src, (BATCH, WINDOW, D_MODEL), dtype=jnp.float32)
    params = init_params(k_par)

    out = transformer_forward(src, params)
    out = jax.block_until_ready(out)

    assert out.shape == (BATCH, WINDOW, N_CLASSES), out.shape
    assert out.dtype == jnp.float32
    assert bool(jnp.all(jnp.isfinite(out)))
    print("KERNEL_OK")
</pallas_src>

<mosaic_0001>
module attributes {stable_mosaic.version = 11 : i64} {
  func.func @transformer_kernel(%arg0: i32, %arg1: memref<2x8x32xf32, #tpu.memory_space<vmem>>, %arg2: memref<8x32xf32, #tpu.memory_space<vmem>>, %arg3: memref<2x160x96xf32, #tpu.memory_space<vmem>>, %arg4: memref<2x8x96xf32, #tpu.memory_space<vmem>>, %arg5: memref<40x128xf32, #tpu.memory_space<vmem>>, %arg6: memref<2x8x128xf32, #tpu.memory_space<vmem>>) attributes {dimension_semantics = [#tpu.dimension_semantics<parallel>], iteration_bounds = array<i64: 1>, scalar_prefetch = 0 : i64, scratch_operands = 0 : i64, tpu.core_type = #tpu.core_type<tc>, window_params = [{transform_indices = @transform_0, window_bounds = array<i64: 2, 8, 32>}, {pipeline_mode = #tpu.pipeline_mode<synchronous>, transform_indices = @transform_1, window_bounds = array<i64: 8, 32>}, {pipeline_mode = #tpu.pipeline_mode<synchronous>, transform_indices = @transform_2, window_bounds = array<i64: 2, 160, 96>}, {pipeline_mode = #tpu.pipeline_mode<synchronous>, transform_indices = @transform_3, window_bounds = array<i64: 2, 8, 96>}, {pipeline_mode = #tpu.pipeline_mode<synchronous>, transform_indices = @transform_4, window_bounds = array<i64: 40, 128>}, {transform_indices = @transform_5, window_bounds = array<i64: 2, 8, 128>}]} {
    %c0 = arith.constant 0 : index
    %c0_0 = arith.constant 0 : index
    %c0_1 = arith.constant 0 : index
    %0 = vector.load %arg1[%c0, %c0_0, %c0_1] : memref<2x8x32xf32, #tpu.memory_space<vmem>>, vector<2x8x32xf32>
    %cst = arith.constant 5.65685415 : f32
    %1 = vector.broadcast %cst : f32 to vector<2x8x32xf32>
    %2 = arith.mulf %0, %1 : vector<2x8x32xf32>
    %c0_2 = arith.constant 0 : index
    %c0_3 = arith.constant 0 : index
    %3 = vector.load %arg2[%c0_2, %c0_3] : memref<8x32xf32, #tpu.memory_space<vmem>>, vector<8x32xf32>
    %4 = vector.shape_cast %3 : vector<8x32xf32> to vector<1x8x32xf32>
    %5 = vector.broadcast %4 : vector<1x8x32xf32> to vector<2x8x32xf32>
    %6 = arith.addf %2, %5 : vector<2x8x32xf32>
    %7 = vector.shape_cast %6 : vector<2x8x32xf32> to vector<16x32xf32>
    %c0_4 = arith.constant 0 : index
    %c0_5 = arith.constant 0 : index
    %c0_6 = arith.constant 0 : index
    %8 = vector.load %arg4[%c0_4, %c0_5, %c0_6] : memref<2x8x96xf32, #tpu.memory_space<vmem>>, vector<1x8x96xf32>
    %9 = vector.shape_cast %8 : vector<1x8x96xf32> to vector<8x96xf32>
    %10 = vector.extract_strided_slice %9 {offsets = [0, 0], sizes = [1, 32], strides = [1, 1]} : vector<8x96xf32> to vector<1x32xf32>
    %11 = vector.extract_strided_slice %9 {offsets = [1, 0], sizes = [1, 32], strides = [1, 1]} : vector<8x96xf32> to vector<1x32xf32>
    %12 = vector.extract_strided_slice %9 {offsets = [2, 0], sizes = [1, 32], strides = [1, 1]} : vector<8x96xf32> to vector<1x32xf32>
    %13 = vector.extract_strided_slice %9 {offsets = [3, 0], sizes = [1, 32], strides = [1, 1]} : vector<8x96xf32> to vector<1x32xf32>
    %14 = vector.extract_strided_slice %9 {offsets = [4, 0], sizes = [1, 96], strides = [1, 1]} : vector<8x96xf32> to vector<1x96xf32>
    %15 = vector.extract_strided_slice %9 {offsets = [5, 0], sizes = [1, 32], strides = [1, 1]} : vector<8x96xf32> to vector<1x32xf32>
    %16 = vector.extract_strided_slice %9 {offsets = [6, 0], sizes = [1, 64], strides = [1, 1]} : vector<8x96xf32> to vector<1x64xf32>
    %17 = vector.extract_strided_slice %9 {offsets = [7, 0], sizes = [1, 32], strides = [1, 1]} : vector<8x96xf32> to vector<1x32xf32>
    %c0_7 = arith.constant 0 : index
    %c0_8 = arith.constant 0 : index
    %c0_9 = arith.constant 0 : index
    %18 = vector.load %arg3[%c0_7, %c0_8, %c0_9] : memref<2x160x96xf32, #tpu.memory_space<vmem>>, vector<1x32x96xf32>
    %19 = vector.shape_cast %18 : vector<1x32x96xf32> to vector<32x96xf32>
    %c0_10 = arith.constant 0 : index
    %c32 = arith.constant 32 : index
    %c0_11 = arith.constant 0 : index
    %20 = vector.load %arg3[%c0_10, %c32, %c0_11] : memref<2x160x96xf32, #tpu.memory_space<vmem>>, vector<1x32x32xf32>
    %21 = vector.shape_cast %20 : vector<1x32x32xf32> to vector<32x32xf32>
    %c0_12 = arith.constant 0 : index
    %c64 = arith.constant 64 : index
    %c0_13 = arith.constant 0 : index
    %22 = vector.load %arg3[%c0_12, %c64, %c0_13] : memref<2x160x96xf32, #tpu.memory_space<vmem>>, vector<1x32x64xf32>
    %23 = vector.shape_cast %22 : vector<1x32x64xf32> to vector<32x64xf32>
    %c0_14 = arith.constant 0 : index
    %c96 = arith.constant 96 : index
    %c0_15 = arith.constant 0 : index
    %24 = vector.load %arg3[%c0_14, %c96, %c0_15] : memref<2x160x96xf32, #tpu.memory_space<vmem>>, vector<1x64x32xf32>
    %25 = vector.shape_cast %24 : vector<1x64x32xf32> to vector<64x32xf32>
    %cst_16 = arith.constant dense<0.000000e+00> : vector<16xf32>
    %26 = vector.multi_reduction <add>, %7, %cst_16 [1] : vector<16x32xf32> to vector<16xf32>
    %27 = vector.shape_cast %26 : vector<16xf32> to vector<16x1xf32>
    %cst_17 = arith.constant 3.200000e+01 : f32
    %28 = vector.broadcast %cst_17 : f32 to vector<16x1xf32>
    %29 = arith.divf %27, %28 : vector<16x1xf32>
    %30 = vector.broadcast %29 : vector<16x1xf32> to vector<16x32xf32>
    %31 = arith.subf %7, %30 : vector<16x32xf32>
    %32 = arith.mulf %31, %31 : vector<16x32xf32>
    %cst_18 = arith.constant dense<0.000000e+00> : vector<16xf32>
    %33 = vector.multi_reduction <add>, %32, %cst_18 [1] : vector<16x32xf32> to vector<16xf32>
    %34 = vector.shape_cast %33 : vector<16xf32> to vector<16x1xf32>
    %cst_19 = arith.constant 0.0322580636 : f32
    %35 = vector.broadcast %cst_19 : f32 to vector<16x1xf32>
    %36 = arith.mulf %34, %35 : vector<16x1xf32>
    %37 = math.sqrt %36 : vector<16x1xf32>
    %cst_20 = arith.constant 9.99999997E-7 : f32
    %38 = vector.broadcast %cst_20 : f32 to vector<16x1xf32>
    %39 = arith.addf %37, %38 : vector<16x1xf32>
    %40 = tpu.reciprocal %39 {approx = true} : vector<16x1xf32> -> vector<16x1xf32>
    %41 = vector.broadcast %29 : vector<16x1xf32> to vector<16x32xf32>
    %42 = arith.subf %7, %41 : vector<16x32xf32>
    %43 = vector.broadcast %10 : vector<1x32xf32> to vector<16x32xf32>
    %44 = arith.mulf %43, %42 : vector<16x32xf32>
    %45 = vector.broadcast %40 : vector<16x1xf32> to vector<16x32xf32>
    %46 = arith.mulf %44, %45 : vector<16x32xf32>
    %47 = vector.broadcast %11 : vector<1x32xf32> to vector<16x32xf32>
    %48 = arith.addf %46, %47 : vector<16x32xf32>
    %cst_21 = arith.constant dense<0.000000e+00> : vector<16x96xf32>
    %49 = tpu.matmul %48, %19, %cst_21 {dimension_numbers = #tpu.dot_dimension_numbers<[1], [0], [0], [1], [0, 0, 1, 1], [], []>} : vector<16x32xf32>, vector<32x96xf32>, vector<16x96xf32> -> vector<16x96xf32>
    %50 = vector.broadcast %14 : vector<1x96xf32> to vector<16x96xf32>
    %51 = arith.addf %49, %50 : vector<16x96xf32>
    %52 = vector.extract_strided_slice %51 {offsets = [0, 0], sizes = [16, 8], strides = [1, 1]} : vector<16x96xf32> to vector<16x8xf32>
    %53 = vector.shape_cast %52 : vector<16x8xf32> to vector<2x8x8xf32>
    %54 = vector.extract_strided_slice %51 {offsets = [0, 8], sizes = [16, 8], strides = [1, 1]} : vector<16x96xf32> to vector<16x8xf32>
    %55 = vector.shape_cast %54 : vector<16x8xf32> to vector<2x8x8xf32>
    %56 = vector.extract_strided_slice %51 {offsets = [0, 16], sizes = [16, 8], strides = [1, 1]} : vector<16x96xf32> to vector<16x8xf32>
    %57 = vector.shape_cast %56 : vector<16x8xf32> to vector<2x8x8xf32>
    %58 = vector.extract_strided_slice %51 {offsets = [0, 24], sizes = [16, 8], strides = [1, 1]} : vector<16x96xf32> to vector<16x8xf32>
    %59 = vector.shape_cast %58 : vector<16x8xf32> to vector<2x8x8xf32>
    %60 = tpu.concatenate %53, %55, %57, %59 in 0 : vector<2x8x8xf32>, vector<2x8x8xf32>, vector<2x8x8xf32>, vector<2x8x8xf32> -> vector<8x8x8xf32>
    %61 = vector.extract_strided_slice %51 {offsets = [0, 32], sizes = [16, 8], strides = [1, 1]} : vector<16x96xf32> to vector<16x8xf32>
    %62 = vector.shape_cast %61 : vector<16x8xf32> to vector<2x8x8xf32>
    %63 = vector.extract_strided_slice %51 {offsets = [0, 40], sizes = [16, 8], strides = [1, 1]} : vector<16x96xf32> to vector<16x8xf32>
    %64 = vector.shape_cast %63 : vector<16x8xf32> to vector<2x8x8xf32>
    %65 = vector.extract_strided_slice %51 {offsets = [0, 48], sizes = [16, 8], strides = [1, 1]} : vector<16x96xf32> to vector<16x8xf32>
    %66 = vector.shape_cast %65 : vector<16x8xf32> to vector<2x8x8xf32>
    %67 = vector.extract_strided_slice %51 {offsets = [0, 56], sizes = [16, 8], strides = [1, 1]} : vector<16x96xf32> to vector<16x8xf32>
    %68 = vector.shape_cast %67 : vector<16x8xf32> to vector<2x8x8xf32>
    %69 = tpu.concatenate %62, %64, %66, %68 in 0 : vector<2x8x8xf32>, vector<2x8x8xf32>, vector<2x8x8xf32>, vector<2x8x8xf32> -> vector<8x8x8xf32>
    %70 = vector.extract_strided_slice %51 {offsets = [0, 64], sizes = [16, 8], strides = [1, 1]} : vector<16x96xf32> to vector<16x8xf32>
    %71 = vector.shape_cast %70 : vector<16x8xf32> to vector<2x8x8xf32>
    %72 = vector.extract_strided_slice %51 {offsets = [0, 72], sizes = [16, 8], strides = [1, 1]} : vector<16x96xf32> to vector<16x8xf32>
    %73 = vector.shape_cast %72 : vector<16x8xf32> to vector<2x8x8xf32>
    %74 = vector.extract_strided_slice %51 {offsets = [0, 80], sizes = [16, 8], strides = [1, 1]} : vector<16x96xf32> to vector<16x8xf32>
    %75 = vector.shape_cast %74 : vector<16x8xf32> to vector<2x8x8xf32>
    %76 = vector.extract_strided_slice %51 {offsets = [0, 88], sizes = [16, 8], strides = [1, 1]} : vector<16x96xf32> to vector<16x8xf32>
    %77 = vector.shape_cast %76 : vector<16x8xf32> to vector<2x8x8xf32>
    %78 = tpu.concatenate %71, %73, %75, %77 in 0 : vector<2x8x8xf32>, vector<2x8x8xf32>, vector<2x8x8xf32>, vector<2x8x8xf32> -> vector<8x8x8xf32>
    "tpu.trace_start"() <{level = 10 : i32, message = "gqd,gkd->gqk"}> : () -> ()
    %cst_22 = arith.constant dense<0.000000e+00> : vector<8x8x8xf32>
    %79 = tpu.matmul %60, %69, %cst_22 {dimension_numbers = #tpu.dot_dimension_numbers<[2], [2], [1], [1], [0, 0, 0, 1, 1, 1], [0], [0]>} : vector<8x8x8xf32>, vector<8x8x8xf32>, vector<8x8x8xf32> -> vector<8x8x8xf32>
    "tpu.trace_stop"() : () -> ()
    %cst_23 = arith.constant 0.353553385 : f32
    %80 = vector.broadcast %cst_23 : f32 to vector<8x8x8xf32>
    %81 = arith.mulf %79, %80 : vector<8x8x8xf32>
    %cst_24 = arith.constant dense<0xFF800000> : vector<8x8xf32>
    %82 = vector.multi_reduction <maximumf>, %81, %cst_24 [2] : vector<8x8x8xf32> to vector<8x8xf32>
    %83 = vector.shape_cast %82 : vector<8x8xf32> to vector<8x8x1xf32>
    %84 = vector.broadcast %83 : vector<8x8x1xf32> to vector<8x8x8xf32>
    %85 = arith.subf %81, %84 : vector<8x8x8xf32>
    %86 = math.exp %85 : vector<8x8x8xf32>
    %cst_25 = arith.constant dense<0.000000e+00> : vector<8x8xf32>
    %87 = vector.multi_reduction <add>, %86, %cst_25 [2] : vector<8x8x8xf32> to vector<8x8xf32>
    %88 = vector.shape_cast %87 : vector<8x8xf32> to vector<8x8x1xf32>
    %89 = tpu.reciprocal %88 {approx = true} : vector<8x8x1xf32> -> vector<8x8x1xf32>
    %90 = vector.broadcast %89 : vector<8x8x1xf32> to vector<8x8x8xf32>
    %91 = arith.mulf %86, %90 : vector<8x8x8xf32>
    "tpu.trace_start"() <{level = 10 : i32, message = "gqk,gkd->gqd"}> : () -> ()
    %cst_26 = arith.constant dense<0.000000e+00> : vector<8x8x8xf32>
    %92 = tpu.matmul %91, %78, %cst_26 {dimension_numbers = #tpu.dot_dimension_numbers<[2], [1], [1], [2], [0, 0, 0, 1, 1, 2], [0], [0]>} : vector<8x8x8xf32>, vector<8x8x8xf32>, vector<8x8x8xf32> -> vector<8x8x8xf32>
    "tpu.trace_stop"() : () -> ()
    %93 = vector.extract_strided_slice %92 {offsets = [0, 0, 0], sizes = [2, 8, 8], strides = [1, 1, 1]} : vector<8x8x8xf32> to vector<2x8x8xf32>
    %94 = vector.shape_cast %93 : vector<2x8x8xf32> to vector<16x8xf32>
    %95 = vector.extract_strided_slice %92 {offsets = [2, 0, 0], sizes = [2, 8, 8], strides = [1, 1, 1]} : vector<8x8x8xf32> to vector<2x8x8xf32>
    %96 = vector.shape_cast %95 : vector<2x8x8xf32> to vector<16x8xf32>
    %97 = vector.extract_strided_slice %92 {offsets = [4, 0, 0], sizes = [2, 8, 8], strides = [1, 1, 1]} : vector<8x8x8xf32> to vector<2x8x8xf32>
    %98 = vector.shape_cast %97 : vector<2x8x8xf32> to vector<16x8xf32>
    %99 = vector.extract_strided_slice %92 {offsets = [6, 0, 0], sizes = [2, 8, 8], strides = [1, 1, 1]} : vector<8x8x8xf32> to vector<2x8x8xf32>
    %100 = vector.shape_cast %99 : vector<2x8x8xf32> to vector<16x8xf32>
    %101 = tpu.concatenate %94, %96, %98, %100 in 1 : vector<16x8xf32>, vector<16x8xf32>, vector<16x8xf32>, vector<16x8xf32> -> vector<16x32xf32>
    %cst_27 = arith.constant dense<0.000000e+00> : vector<16x32xf32>
    %102 = tpu.matmul %101, %21, %cst_27 {dimension_numbers = #tpu.dot_dimension_numbers<[1], [0], [0], [1], [0, 0, 1, 1], [], []>} : vector<16x32xf32>, vector<32x32xf32>, vector<16x32xf32> -> vector<16x32xf32>
    %103 = arith.addf %7, %102 : vector<16x32xf32>
    %104 = vector.broadcast %15 : vector<1x32xf32> to vector<16x32xf32>
    %105 = arith.addf %103, %104 : vector<16x32xf32>
    %cst_28 = arith.constant dense<0.000000e+00> : vector<16xf32>
    %106 = vector.multi_reduction <add>, %105, %cst_28 [1] : vector<16x32xf32> to vector<16xf32>
    %107 = vector.shape_cast %106 : vector<16xf32> to vector<16x1xf32>
    %cst_29 = arith.constant 3.200000e+01 : f32
    %108 = vector.broadcast %cst_29 : f32 to vector<16x1xf32>
    %109 = arith.divf %107, %108 : vector<16x1xf32>
    %110 = vector.broadcast %109 : vector<16x1xf32> to vector<16x32xf32>
    %111 = arith.subf %105, %110 : vector<16x32xf32>
    %112 = arith.mulf %111, %111 : vector<16x32xf32>
    %cst_30 = arith.constant dense<0.000000e+00> : vector<16xf32>
    %113 = vector.multi_reduction <add>, %112, %cst_30 [1] : vector<16x32xf32> to vector<16xf32>
    %114 = vector.shape_cast %113 : vector<16xf32> to vector<16x1xf32>
    %cst_31 = arith.constant 0.0322580636 : f32
    %115 = vector.broadcast %cst_31 : f32 to vector<16x1xf32>
    %116 = arith.mulf %114, %115 : vector<16x1xf32>
    %117 = math.sqrt %116 : vector<16x1xf32>
    %cst_32 = arith.constant 9.99999997E-7 : f32
    %118 = vector.broadcast %cst_32 : f32 to vector<16x1xf32>
    %119 = arith.addf %117, %118 : vector<16x1xf32>
    %120 = tpu.reciprocal %119 {approx = true} : vector<16x1xf32> -> vector<16x1xf32>
    %121 = vector.broadcast %109 : vector<16x1xf32> to vector<16x32xf32>
    %122 = arith.subf %105, %121 : vector<16x32xf32>
    %123 = vector.broadcast %12 : vector<1x32xf32> to vector<16x32xf32>
    %124 = arith.mulf %123, %122 : vector<16x32xf32>
    %125 = vector.broadcast %120 : vector<16x1xf32> to vector<16x32xf32>
    %126 = arith.mulf %124, %125 : vector<16x32xf32>
    %127 = vector.broadcast %13 : vector<1x32xf32> to vector<16x32xf32>
    %128 = arith.addf %126, %127 : vector<16x32xf32>
    %cst_33 = arith.constant dense<0.000000e+00> : vector<16x64xf32>
    %129 = tpu.matmul %128, %23, %cst_33 {dimension_numbers = #tpu.dot_dimension_numbers<[1], [0], [0], [1], [0, 0, 1, 1], [], []>} : vector<16x32xf32>, vector<32x64xf32>, vector<16x64xf32> -> vector<16x64xf32>
    %130 = vector.broadcast %16 : vector<1x64xf32> to vector<16x64xf32>
    %131 = arith.addf %129, %130 : vector<16x64xf32>
    %cst_34 = arith.constant 0.000000e+00 : f32
    %132 = vector.broadcast %cst_34 : f32 to vector<16x64xf32>
    %133 = arith.maximumf %131, %132 : vector<16x64xf32>
    %cst_35 = arith.constant dense<0.000000e+00> : vector<16x32xf32>
    %134 = tpu.matmul %133, %25, %cst_35 {dimension_numbers = #tpu.dot_dimension_numbers<[1], [0], [0], [1], [0, 0, 1, 1], [], []>} : vector<16x64xf32>, vector<64x32xf32>, vector<16x32xf32> -> vector<16x32xf32>
    %135 = arith.addf %105, %134 : vector<16x32xf32>
    %136 = vector.broadcast %17 : vector<1x32xf32> to vector<16x32xf32>
    %137 = arith.addf %135, %136 : vector<16x32xf32>
    %c1 = arith.constant 1 : index
    %c0_36 = arith.constant 0 : index
    %c0_37 = arith.constant 0 : index
    %138 = vector.load %arg4[%c1, %c0_36, %c0_37] : memref<2x8x96xf32, #tpu.memory_space<vmem>>, vector<1x8x96xf32>
    %139 = vector.shape_cast %138 : vector<1x8x96xf32> to vector<8x96xf32>
    %140 = vector.extract_strided_slice %139 {offsets = [0, 0], sizes = [1, 32], strides = [1, 1]} : vector<8x96xf32> to vector<1x32xf32>
    %141 = vector.extract_strided_slice %139 {offsets = [1, 0], sizes = [1, 32], strides = [1, 1]} : vector<8x96xf32> to vector<1x32xf32>
    %142 = vector.extract_strided_slice %139 {offsets = [2, 0], sizes = [1, 32], strides = [1, 1]} : vector<8x96xf32> to vector<1x32xf32>
    %143 = vector.extract_strided_slice %139 {offsets = [3, 0], sizes = [1, 32], strides = [1, 1]} : vector<8x96xf32> to vector<1x32xf32>
    %144 = vector.extract_strided_slice %139 {offsets = [4, 0], sizes = [1, 96], strides = [1, 1]} : vector<8x96xf32> to vector<1x96xf32>
    %145 = vector.extract_strided_slice %139 {offsets = [5, 0], sizes = [1, 32], strides = [1, 1]} : vector<8x96xf32> to vector<1x32xf32>
    %146 = vector.extract_strided_slice %139 {offsets = [6, 0], sizes = [1, 64], strides = [1, 1]} : vector<8x96xf32> to vector<1x64xf32>
    %147 = vector.extract_strided_slice %139 {offsets = [7, 0], sizes = [1, 32], strides = [1, 1]} : vector<8x96xf32> to vector<1x32xf32>
    %c1_38 = arith.constant 1 : index
    %c0_39 = arith.constant 0 : index
    %c0_40 = arith.constant 0 : index
    %148 = vector.load %arg3[%c1_38, %c0_39, %c0_40] : memref<2x160x96xf32, #tpu.memory_space<vmem>>, vector<1x32x96xf32>
    %149 = vector.shape_cast %148 : vector<1x32x96xf32> to vector<32x96xf32>
    %c1_41 = arith.constant 1 : index
    %c32_42 = arith.constant 32 : index
    %c0_43 = arith.constant 0 : index
    %150 = vector.load %arg3[%c1_41, %c32_42, %c0_43] : memref<2x160x96xf32, #tpu.memory_space<vmem>>, vector<1x32x32xf32>
    %151 = vector.shape_cast %150 : vector<1x32x32xf32> to vector<32x32xf32>
    %c1_44 = arith.constant 1 : index
    %c64_45 = arith.constant 64 : index
    %c0_46 = arith.constant 0 : index
    %152 = vector.load %arg3[%c1_44, %c64_45, %c0_46] : memref<2x160x96xf32, #tpu.memory_space<vmem>>, vector<1x32x64xf32>
    %153 = vector.shape_cast %152 : vector<1x32x64xf32> to vector<32x64xf32>
    %c1_47 = arith.constant 1 : index
    %c96_48 = arith.constant 96 : index
    %c0_49 = arith.constant 0 : index
    %154 = vector.load %arg3[%c1_47, %c96_48, %c0_49] : memref<2x160x96xf32, #tpu.memory_space<vmem>>, vector<1x64x32xf32>
    %155 = vector.shape_cast %154 : vector<1x64x32xf32> to vector<64x32xf32>
    %cst_50 = arith.constant dense<0.000000e+00> : vector<16xf32>
    %156 = vector.multi_reduction <add>, %137, %cst_50 [1] : vector<16x32xf32> to vector<16xf32>
    %157 = vector.shape_cast %156 : vector<16xf32> to vector<16x1xf32>
    %cst_51 = arith.constant 3.200000e+01 : f32
    %158 = vector.broadcast %cst_51 : f32 to vector<16x1xf32>
    %159 = arith.divf %157, %158 : vector<16x1xf32>
    %160 = vector.broadcast %159 : vector<16x1xf32> to vector<16x32xf32>
    %161 = arith.subf %137, %160 : vector<16x32xf32>
    %162 = arith.mulf %161, %161 : vector<16x32xf32>
    %cst_52 = arith.constant dense<0.000000e+00> : vector<16xf32>
    %163 = vector.multi_reduction <add>, %162, %cst_52 [1] : vector<16x32xf32> to vector<16xf32>
    %164 = vector.shape_cast %163 : vector<16xf32> to vector<16x1xf32>
    %cst_53 = arith.constant 0.0322580636 : f32
    %165 = vector.broadcast %cst_53 : f32 to vector<16x1xf32>
    %166 = arith.mulf %164, %165 : vector<16x1xf32>
    %167 = math.sqrt %166 : vector<16x1xf32>
    %cst_54 = arith.constant 9.99999997E-7 : f32
    %168 = vector.broadcast %cst_54 : f32 to vector<16x1xf32>
    %169 = arith.addf %167, %168 : vector<16x1xf32>
    %170 = tpu.reciprocal %169 {approx = true} : vector<16x1xf32> -> vector<16x1xf32>
    %171 = vector.broadcast %159 : vector<16x1xf32> to vector<16x32xf32>
    %172 = arith.subf %137, %171 : vector<16x32xf32>
    %173 = vector.broadcast %140 : vector<1x32xf32> to vector<16x32xf32>
    %174 = arith.mulf %173, %172 : vector<16x32xf32>
    %175 = vector.broadcast %170 : vector<16x1xf32> to vector<16x32xf32>
    %176 = arith.mulf %174, %175 : vector<16x32xf32>
    %177 = vector.broadcast %141 : vector<1x32xf32> to vector<16x32xf32>
    %178 = arith.addf %176, %177 : vector<16x32xf32>
    %cst_55 = arith.constant dense<0.000000e+00> : vector<16x96xf32>
    %179 = tpu.matmul %178, %149, %cst_55 {dimension_numbers = #tpu.dot_dimension_numbers<[1], [0], [0], [1], [0, 0, 1, 1], [], []>} : vector<16x32xf32>, vector<32x96xf32>, vector<16x96xf32> -> vector<16x96xf32>
    %180 = vector.broadcast %144 : vector<1x96xf32> to vector<16x96xf32>
    %181 = arith.addf %179, %180 : vector<16x96xf32>
    %182 = vector.extract_strided_slice %181 {offsets = [0, 0], sizes = [16, 8], strides = [1, 1]} : vector<16x96xf32> to vector<16x8xf32>
    %183 = vector.shape_cast %182 : vector<16x8xf32> to vector<2x8x8xf32>
    %184 = vector.extract_strided_slice %181 {offsets = [0, 8], sizes = [16, 8], strides = [1, 1]} : vector<16x96xf32> to vector<16x8xf32>
    %185 = vector.shape_cast %184 : vector<16x8xf32> to vector<2x8x8xf32>
    %186 = vector.extract_strided_slice %181 {offsets = [0, 16], sizes = [16, 8], strides = [1, 1]} : vector<16x96xf32> to vector<16x8xf32>
    %187 = vector.shape_cast %186 : vector<16x8xf32> to vector<2x8x8xf32>
    %188 = vector.extract_strided_slice %181 {offsets = [0, 24], sizes = [16, 8], strides = [1, 1]} : vector<16x96xf32> to vector<16x8xf32>
    %189 = vector.shape_cast %188 : vector<16x8xf32> to vector<2x8x8xf32>
    %190 = tpu.concatenate %183, %185, %187, %189 in 0 : vector<2x8x8xf32>, vector<2x8x8xf32>, vector<2x8x8xf32>, vector<2x8x8xf32> -> vector<8x8x8xf32>
    %191 = vector.extract_strided_slice %181 {offsets = [0, 32], sizes = [16, 8], strides = [1, 1]} : vector<16x96xf32> to vector<16x8xf32>
    %192 = vector.shape_cast %191 : vector<16x8xf32> to vector<2x8x8xf32>
    %193 = vector.extract_strided_slice %181 {offsets = [0, 40], sizes = [16, 8], strides = [1, 1]} : vector<16x96xf32> to vector<16x8xf32>
    %194 = vector.shape_cast %193 : vector<16x8xf32> to vector<2x8x8xf32>
    %195 = vector.extract_strided_slice %181 {offsets = [0, 48], sizes = [16, 8], strides = [1, 1]} : vector<16x96xf32> to vector<16x8xf32>
    %196 = vector.shape_cast %195 : vector<16x8xf32> to vector<2x8x8xf32>
    %197 = vector.extract_strided_slice %181 {offsets = [0, 56], sizes = [16, 8], strides = [1, 1]} : vector<16x96xf32> to vector<16x8xf32>
    %198 = vector.shape_cast %197 : vector<16x8xf32> to vector<2x8x8xf32>
    %199 = tpu.concatenate %192, %194, %196, %198 in 0 : vector<2x8x8xf32>, vector<2x8x8xf32>, vector<2x8x8xf32>, vector<2x8x8xf32> -> vector<8x8x8xf32>
    %200 = vector.extract_strided_slice %181 {offsets = [0, 64], sizes = [16, 8], strides = [1, 1]} : vector<16x96xf32> to vector<16x8xf32>
    %201 = vector.shape_cast %200 : vector<16x8xf32> to vector<2x8x8xf32>
    %202 = vector.extract_strided_slice %181 {offsets = [0, 72], sizes = [16, 8], strides = [1, 1]} : vector<16x96xf32> to vector<16x8xf32>
    %203 = vector.shape_cast %202 : vector<16x8xf32> to vector<2x8x8xf32>
    %204 = vector.extract_strided_slice %181 {offsets = [0, 80], sizes = [16, 8], strides = [1, 1]} : vector<16x96xf32> to vector<16x8xf32>
    %205 = vector.shape_cast %204 : vector<16x8xf32> to vector<2x8x8xf32>
    %206 = vector.extract_strided_slice %181 {offsets = [0, 88], sizes = [16, 8], strides = [1, 1]} : vector<16x96xf32> to vector<16x8xf32>
    %207 = vector.shape_cast %206 : vector<16x8xf32> to vector<2x8x8xf32>
    %208 = tpu.concatenate %201, %203, %205, %207 in 0 : vector<2x8x8xf32>, vector<2x8x8xf32>, vector<2x8x8xf32>, vector<2x8x8xf32> -> vector<8x8x8xf32>
    "tpu.trace_start"() <{level = 10 : i32, message = "gqd,gkd->gqk"}> : () -> ()
    %cst_56 = arith.constant dense<0.000000e+00> : vector<8x8x8xf32>
    %209 = tpu.matmul %190, %199, %cst_56 {dimension_numbers = #tpu.dot_dimension_numbers<[2], [2], [1], [1], [0, 0, 0, 1, 1, 1], [0], [0]>} : vector<8x8x8xf32>, vector<8x8x8xf32>, vector<8x8x8xf32> -> vector<8x8x8xf32>
    "tpu.trace_stop"() : () -> ()
    %cst_57 = arith.constant 0.353553385 : f32
    %210 = vector.broadcast %cst_57 : f32 to vector<8x8x8xf32>
    %211 = arith.mulf %209, %210 : vector<8x8x8xf32>
    %cst_58 = arith.constant dense<0xFF800000> : vector<8x8xf32>
    %212 = vector.multi_reduction <maximumf>, %211, %cst_58 [2] : vector<8x8x8xf32> to vector<8x8xf32>
    %213 = vector.shape_cast %212 : vector<8x8xf32> to vector<8x8x1xf32>
    %214 = vector.broadcast %213 : vector<8x8x1xf32> to vector<8x8x8xf32>
    %215 = arith.subf %211, %214 : vector<8x8x8xf32>
    %216 = math.exp %215 : vector<8x8x8xf32>
    %cst_59 = arith.constant dense<0.000000e+00> : vector<8x8xf32>
    %217 = vector.multi_reduction <add>, %216, %cst_59 [2] : vector<8x8x8xf32> to vector<8x8xf32>
    %218 = vector.shape_cast %217 : vector<8x8xf32> to vector<8x8x1xf32>
    %219 = tpu.reciprocal %218 {approx = true} : vector<8x8x1xf32> -> vector<8x8x1xf32>
    %220 = vector.broadcast %219 : vector<8x8x1xf32> to vector<8x8x8xf32>
    %221 = arith.mulf %216, %220 : vector<8x8x8xf32>
    "tpu.trace_start"() <{level = 10 : i32, message = "gqk,gkd->gqd"}> : () -> ()
    %cst_60 = arith.constant dense<0.000000e+00> : vector<8x8x8xf32>
    %222 = tpu.matmul %221, %208, %cst_60 {dimension_numbers = #tpu.dot_dimension_numbers<[2], [1], [1], [2], [0, 0, 0, 1, 1, 2], [0], [0]>} : vector<8x8x8xf32>, vector<8x8x8xf32>, vector<8x8x8xf32> -> vector<8x8x8xf32>
    "tpu.trace_stop"() : () -> ()
    %223 = vector.extract_strided_slice %222 {offsets = [0, 0, 0], sizes = [2, 8, 8], strides = [1, 1, 1]} : vector<8x8x8xf32> to vector<2x8x8xf32>
    %224 = vector.shape_cast %223 : vector<2x8x8xf32> to vector<16x8xf32>
    %225 = vector.extract_strided_slice %222 {offsets = [2, 0, 0], sizes = [2, 8, 8], strides = [1, 1, 1]} : vector<8x8x8xf32> to vector<2x8x8xf32>
    %226 = vector.shape_cast %225 : vector<2x8x8xf32> to vector<16x8xf32>
    %227 = vector.extract_strided_slice %222 {offsets = [4, 0, 0], sizes = [2, 8, 8], strides = [1, 1, 1]} : vector<8x8x8xf32> to vector<2x8x8xf32>
    %228 = vector.shape_cast %227 : vector<2x8x8xf32> to vector<16x8xf32>
    %229 = vector.extract_strided_slice %222 {offsets = [6, 0, 0], sizes = [2, 8, 8], strides = [1, 1, 1]} : vector<8x8x8xf32> to vector<2x8x8xf32>
    %230 = vector.shape_cast %229 : vector<2x8x8xf32> to vector<16x8xf32>
    %231 = tpu.concatenate %224, %226, %228, %230 in 1 : vector<16x8xf32>, vector<16x8xf32>, vector<16x8xf32>, vector<16x8xf32> -> vector<16x32xf32>
    %cst_61 = arith.constant dense<0.000000e+00> : vector<16x32xf32>
    %232 = tpu.matmul %231, %151, %cst_61 {dimension_numbers = #tpu.dot_dimension_numbers<[1], [0], [0], [1], [0, 0, 1, 1], [], []>} : vector<16x32xf32>, vector<32x32xf32>, vector<16x32xf32> -> vector<16x32xf32>
    %233 = arith.addf %137, %232 : vector<16x32xf32>
    %234 = vector.broadcast %145 : vector<1x32xf32> to vector<16x32xf32>
    %235 = arith.addf %233, %234 : vector<16x32xf32>
    %cst_62 = arith.constant dense<0.000000e+00> : vector<16xf32>
    %236 = vector.multi_reduction <add>, %235, %cst_62 [1] : vector<16x32xf32> to vector<16xf32>
    %237 = vector.shape_cast %236 : vector<16xf32> to vector<16x1xf32>
    %cst_63 = arith.constant 3.200000e+01 : f32
    %238 = vector.broadcast %cst_63 : f32 to vector<16x1xf32>
    %239 = arith.divf %237, %238 : vector<16x1xf32>
    %240 = vector.broadcast %239 : vector<16x1xf32> to vector<16x32xf32>
    %241 = arith.subf %235, %240 : vector<16x32xf32>
    %242 = arith.mulf %241, %241 : vector<16x32xf32>
    %cst_64 = arith.constant dense<0.000000e+00> : vector<16xf32>
    %243 = vector.multi_reduction <add>, %242, %cst_64 [1] : vector<16x32xf32> to vector<16xf32>
    %244 = vector.shape_cast %243 : vector<16xf32> to vector<16x1xf32>
    %cst_65 = arith.constant 0.0322580636 : f32
    %245 = vector.broadcast %cst_65 : f32 to vector<16x1xf32>
    %246 = arith.mulf %244, %245 : vector<16x1xf32>
    %247 = math.sqrt %246 : vector<16x1xf32>
    %cst_66 = arith.constant 9.99999997E-7 : f32
    %248 = vector.broadcast %cst_66 : f32 to vector<16x1xf32>
    %249 = arith.addf %247, %248 : vector<16x1xf32>
    %250 = tpu.reciprocal %249 {approx = true} : vector<16x1xf32> -> vector<16x1xf32>
    %251 = vector.broadcast %239 : vector<16x1xf32> to vector<16x32xf32>
    %252 = arith.subf %235, %251 : vector<16x32xf32>
    %253 = vector.broadcast %142 : vector<1x32xf32> to vector<16x32xf32>
    %254 = arith.mulf %253, %252 : vector<16x32xf32>
    %255 = vector.broadcast %250 : vector<16x1xf32> to vector<16x32xf32>
    %256 = arith.mulf %254, %255 : vector<16x32xf32>
    %257 = vector.broadcast %143 : vector<1x32xf32> to vector<16x32xf32>
    %258 = arith.addf %256, %257 : vector<16x32xf32>
    %cst_67 = arith.constant dense<0.000000e+00> : vector<16x64xf32>
    %259 = tpu.matmul %258, %153, %cst_67 {dimension_numbers = #tpu.dot_dimension_numbers<[1], [0], [0], [1], [0, 0, 1, 1], [], []>} : vector<16x32xf32>, vector<32x64xf32>, vector<16x64xf32> -> vector<16x64xf32>
    %260 = vector.broadcast %146 : vector<1x64xf32> to vector<16x64xf32>
    %261 = arith.addf %259, %260 : vector<16x64xf32>
    %cst_68 = arith.constant 0.000000e+00 : f32
    %262 = vector.broadcast %cst_68 : f32 to vector<16x64xf32>
    %263 = arith.maximumf %261, %262 : vector<16x64xf32>
    %cst_69 = arith.constant dense<0.000000e+00> : vector<16x32xf32>
    %264 = tpu.matmul %263, %155, %cst_69 {dimension_numbers = #tpu.dot_dimension_numbers<[1], [0], [0], [1], [0, 0, 1, 1], [], []>} : vector<16x64xf32>, vector<64x32xf32>, vector<16x32xf32> -> vector<16x32xf32>
    %265 = arith.addf %235, %264 : vector<16x32xf32>
    %266 = vector.broadcast %147 : vector<1x32xf32> to vector<16x32xf32>
    %267 = arith.addf %265, %266 : vector<16x32xf32>
    %c0_70 = arith.constant 0 : index
    %c0_71 = arith.constant 0 : index
    %268 = vector.load %arg5[%c0_70, %c0_71] : memref<40x128xf32, #tpu.memory_space<vmem>>, vector<32x128xf32>
    %c32_72 = arith.constant 32 : index
    %c0_73 = arith.constant 0 : index
    %269 = vector.load %arg5[%c32_72, %c0_73] : memref<40x128xf32, #tpu.memory_space<vmem>>, vector<1x128xf32>
    %c33 = arith.constant 33 : index
    %c0_74 = arith.constant 0 : index
    %270 = vector.load %arg5[%c33, %c0_74] : memref<40x128xf32, #tpu.memory_space<vmem>>, vector<1x32xf32>
    %c34 = arith.constant 34 : index
    %c0_75 = arith.constant 0 : index
    %271 = vector.load %arg5[%c34, %c0_75] : memref<40x128xf32, #tpu.memory_space<vmem>>, vector<1x32xf32>
    %cst_76 = arith.constant dense<0.000000e+00> : vector<16xf32>
    %272 = vector.multi_reduction <add>, %267, %cst_76 [1] : vector<16x32xf32> to vector<16xf32>
    %273 = vector.shape_cast %272 : vector<16xf32> to vector<16x1xf32>
    %cst_77 = arith.constant 3.200000e+01 : f32
    %274 = vector.broadcast %cst_77 : f32 to vector<16x1xf32>
    %275 = arith.divf %273, %274 : vector<16x1xf32>
    %276 = vector.broadcast %275 : vector<16x1xf32> to vector<16x32xf32>
    %277 = arith.subf %267, %276 : vector<16x32xf32>
    %278 = arith.mulf %277, %277 : vector<16x32xf32>
    %cst_78 = arith.constant dense<0.000000e+00> : vector<16xf32>
    %279 = vector.multi_reduction <add>, %278, %cst_78 [1] : vector<16x32xf32> to vector<16xf32>
    %280 = vector.shape_cast %279 : vector<16xf32> to vector<16x1xf32>
    %cst_79 = arith.constant 0.0322580636 : f32
    %281 = vector.broadcast %cst_79 : f32 to vector<16x1xf32>
    %282 = arith.mulf %280, %281 : vector<16x1xf32>
    %283 = math.sqrt %282 : vector<16x1xf32>
    %cst_80 = arith.constant 9.99999997E-7 : f32
    %284 = vector.broadcast %cst_80 : f32 to vector<16x1xf32>
    %285 = arith.addf %283, %284 : vector<16x1xf32>
    %286 = tpu.reciprocal %285 {approx = true} : vector<16x1xf32> -> vector<16x1xf32>
    %287 = vector.broadcast %275 : vector<16x1xf32> to vector<16x32xf32>
    %288 = arith.subf %267, %287 : vector<16x32xf32>
    %289 = vector.broadcast %270 : vector<1x32xf32> to vector<16x32xf32>
    %290 = arith.mulf %289, %288 : vector<16x32xf32>
    %291 = vector.broadcast %286 : vector<16x1xf32> to vector<16x32xf32>
    %292 = arith.mulf %290, %291 : vector<16x32xf32>
    %293 = vector.broadcast %271 : vector<1x32xf32> to vector<16x32xf32>
    %294 = arith.addf %292, %293 : vector<16x32xf32>
    %cst_81 = arith.constant dense<0.000000e+00> : vector<16x128xf32>
    %295 = tpu.matmul %294, %268, %cst_81 {dimension_numbers = #tpu.dot_dimension_numbers<[1], [0], [0], [1], [0, 0, 1, 1], [], []>} : vector<16x32xf32>, vector<32x128xf32>, vector<16x128xf32> -> vector<16x128xf32>
    %296 = vector.broadcast %269 : vector<1x128xf32> to vector<16x128xf32>
    %297 = arith.addf %295, %296 : vector<16x128xf32>
    %298 = vector.shape_cast %297 : vector<16x128xf32> to vector<2x8x128xf32>
    %c0_82 = arith.constant 0 : index
    %c0_83 = arith.constant 0 : index
    %c0_84 = arith.constant 0 : index
    %299 = vector.load %arg6[%c0_82, %c0_83, %c0_84] : memref<2x8x128xf32, #tpu.memory_space<vmem>>, vector<2x8x128xf32>
    tpu.vector_store %arg6[%c0_82, %c0_83, %c0_84], %298 {strides = array<i32>} : memref<2x8x128xf32, #tpu.memory_space<vmem>>, vector<2x8x128xf32>,
    return
  }
  func.func @transform_0(%arg0: i32) -> (i32, i32, i32) {
    %c0_i32 = arith.constant 0 : i32
    %c0_i32_0 = arith.constant 0 : i32
    %c0_i32_1 = arith.constant 0 : i32
    return %arg0, %c0_i32, %c0_i32_0 : i32, i32, i32
  }
  func.func @transform_1(%arg0: i32) -> (i32, i32) {
    %c0_i32 = arith.constant 0 : i32
    %c0_i32_0 = arith.constant 0 : i32
    %c0_i32_1 = arith.constant 0 : i32
    return %c0_i32, %c0_i32_0 : i32, i32
  }
  func.func @transform_2(%arg0: i32) -> (i32, i32, i32) {
    %c0_i32 = arith.constant 0 : i32
    %c0_i32_0 = arith.constant 0 : i32
    %c0_i32_1 = arith.constant 0 : i32
    %c0_i32_2 = arith.constant 0 : i32
    return %c0_i32, %c0_i32_0, %c0_i32_1 : i32, i32, i32
  }
  func.func @transform_3(%arg0: i32) -> (i32, i32, i32) {
    %c0_i32 = arith.constant 0 : i32
    %c0_i32_0 = arith.constant 0 : i32
    %c0_i32_1 = arith.constant 0 : i32
    %c0_i32_2 = arith.constant 0 : i32
    return %c0_i32, %c0_i32_0, %c0_i32_1 : i32, i32, i32
  }
  func.func @transform_4(%arg0: i32) -> (i32, i32) {
    %c0_i32 = arith.constant 0 : i32
    %c0_i32_0 = arith.constant 0 : i32
    %c0_i32_1 = arith.constant 0 : i32
    return %c0_i32, %c0_i32_0 : i32, i32
  }
  func.func @transform_5(%arg0: i32) -> (i32, i32, i32) {
    %c0_i32 = arith.constant 0 : i32
    %c0_i32_0 = arith.constant 0 : i32
    %c0_i32_1 = arith.constant 0 : i32
    return %arg0, %c0_i32, %c0_i32_0 : i32, i32, i32
  }
}

</mosaic_0001>

<bundles_post_ra>
// kernel: transformer_forward.1
= control target key start
LH: loop header
LB: loop body
LE: loop exit
PB: predicated region body
PF: predicated region fallthrough
CT: control target
= control target key end

     0   :  { %10 = vsyncpa [#allocation3], 0  ;;  %s2659_s0 = inlined_call_operand.hbm [shape: f32[2,8,32], index: 0, kind: input, shape index: {}]   ;;  %s2660_s1 = inlined_call_operand.hbm [shape: f32[8,32], index: 1, kind: input, shape index: {}]   ;;  %s2661_s2 = inlined_call_operand.hbm [shape: f32[2,160,96], index: 2, kind: input, shape index: {}]   ;;  %s2662_s3 = inlined_call_operand.hbm [shape: f32[2,8,96], index: 3, kind: input, shape index: {}]   ;;  %s2663_s4 = inlined_call_operand.hbm [shape: f32[40,128], index: 4, kind: input, shape index: {}]   ;;  %s2664_s5 = inlined_call_operand.vmem [shape: f32[2,8,128], index: 5, kind: output, shape index: {}]  }
   0x1   :  { %11 = vsyncpa [#allocation5], 0  ;;  %s31_s20 = sshll.u32 %s2660_s1, 4  ;;  %s32_s20 = int_to_ptr.hbm [resolvable:$true] %s31_s20 }
   0x2   :  { %12 = vsyncpa [#allocation8], 0  ;;  %s2203_s21 = smov [#allocation4]   ;;  %s54_s25 = sshll.u32 %s2662_s3, 4  ;;  %s55_s25 = int_to_ptr.hbm [resolvable:$true] %s54_s25 }
   0x3   :  { %s33_s22 = sshll.u32 %s2203_s21, 4  ;;  %s2204_s26 = smov [#allocation7]   ;;  %s34_s22 = int_to_ptr.vmem [resolvable:$true] %s33_s22 }
   0x4   :  { %36 = dma.hbm_to_vmem [thread:$0]  %s32_s20, 128, %s34_s22, [#allocation5]  }
   0x5   :  { %s56_s27 = sshll.u32 %s2204_s26, 4  ;;  %s17_s30 = sshll.u32 %s2659_s0, 4  ;;  %s57_s27 = int_to_ptr.vmem [resolvable:$true] %s56_s27  ;;  %s18_s30 = int_to_ptr.hbm [resolvable:$true] %s17_s30 }
   0x6   :  { %s2205_s1 = smov 128   ;;  %s2206_s6 = smov 8  }
   0x7   :  { %62 = dma.hbm_to_vmem [thread:$0]  %s55_s25, 256, %s57_s27, [#allocation8], %s2205_s1, %s2205_s1, %s2206_s6  }
   0x8   :  { %s41_s9 = sshll.u32 %s2661_s2, 4  ;;  %s2207_s10 = smov [#allocation2]   ;;  %s42_s9 = int_to_ptr.hbm [resolvable:$true] %s41_s9 }
   0x9   :  { %s19_s11 = sshll.u32 %s2207_s10, 4  ;;  %s2208_s3 = smov [#allocation6]   ;;  %s20_s11 = int_to_ptr.vmem [resolvable:$true] %s19_s11 }
   0xa   :  { %25 = dma.hbm_to_vmem [thread:$0]  %s18_s30, 256, %s20_s11, [#allocation3], %s2205_s1, %s2205_s1, %s2206_s6  }
   0xb   :  { %s43_s12 = sshll.u32 %s2208_s3, 4  ;;  %s67_s14 = sshll.u32 %s2663_s4, 4  ;;  %s44_s12 = int_to_ptr.vmem [resolvable:$true] %s43_s12  ;;  %s68_s14 = int_to_ptr.hbm [resolvable:$true] %s67_s14 }
   0xc   :  { %49 = dma.hbm_to_vmem [thread:$0]  %s42_s9, 5120, %s44_s12, [#allocation5], %s2205_s1, %s2205_s1, %s2206_s6  }
   0xd   :  { %s2209_s15 = smov [#allocation9]  }
   0xe   :  { %s69_s16 = sshll.u32 %s2209_s15, 4  ;;  %s70_s16 = int_to_ptr.vmem [resolvable:$true] %s69_s16 }
   0xf   :  { %75 = dma.hbm_to_vmem [thread:$0]  %s68_s14, 640, %s70_s16, [#allocation8], %s2205_s1, %s2205_s1, %s2206_s6  }
  0x10   :  { %2197 = dma.done.wait [#allocation3], 256  }
  0x11   :  { %2198 = vsyncadd [#allocation3], 4294967040 }
  0x12   :  { %2199 = dma.done.wait [#allocation5], 5248  }
  0x13   :  { %2200 = vsyncadd [#allocation5], 4294962048 }
  0x14   :  { %2201 = dma.done.wait [#allocation8], 896  }
  0x15   :  { %2202 = vsyncadd [#allocation8], 4294966400  ;;  %v96_v0 = vld [vmem:[#allocation2] sm:$0xff]  ;;  %v100_v1 = vld [vmem:[#allocation4] sm:$0xff]  ;;  %vm124_vm0 = vcmask 261120   ;;  %v2210_v9 = vmov 32.0  }
  0x16   :  { %v97_v2 = vld [vmem:[#allocation2 + $0x8] sm:$0xff]  ;;  %v98_v3 = vmul.f32 5.656854, %v96_v0  ;;  %1971 = vrcp.f32 %v2210_v9  ;;  %v107_v26 = vld [vmem:[#allocation6 + $0x18] sm:$0xff]  ;;  %v105_v28 = vld [vmem:[#allocation6 + $0x8] sm:$0xff]  ;;  %s2211_s2 = smov 120  }
  0x17   :  { %v99_v5 = vmul.f32 5.656854, %v97_v2  ;;  %v106_v27 = vld [vmem:[#allocation6 + $0x10] sm:$0xff]  ;;  %207 = vmatpush.msra.mxu0 %v107_v26  ;;  %v104_v29 = vld [vmem:[#allocation6] sm:$0xff]  ;;  %s2212_s4 = smov 112   ;;  %s2213_s17 = smov 104  }
  0x18   :  { %v2267_v4 = vadd.f32 %v100_v1, %v98_v3  ;;  %v2283_v48 = vld [vmem:[#allocation7] sm:$0xff]  ;;  %s2214_s18 = smov 96   ;;  %vm234_vm6 = vcmask 64512   ;;  %s2215_s19 = smov 64   ;;  %vm771_vm7 = vcmask 130048   ;;  %vm774_vm8 = vcmask 195584  }
  0x19   :  { %v2271_v7 = vadd.f32 %v100_v1, %v99_v5  ;;  %208 = vmatpush.msra.mxu0 %v106_v27  ;;  %v180_v52 = vperm.slane %v2283_v48, 0  ;;  %v185_v57 = vperm.slane %v2283_v48, 1  ;;  %v188_v3 = vperm.slane %v2283_v48, 4  ;;  %s2216_s20 = smov 24   ;;  %s2217_s21 = smov 16  }
  0x1a   :  { %v125_v6 = vsel %vm124_vm0, %v2267_v4, 0.0  ;;  %vm899_vm13 = vcmask 523264  }
  0x1b   :  { %126 = vadd.xlane.f32.xlu0 %v125_v6  ;;  %v128_v8 = vsel %vm124_vm0, %v2271_v7, 0.0  ;;  %209 = vmatpush.msra.mxu0 %v105_v28 }
  0x1c   :  { %v1972_v10 = vpop.eup %1971 }
  0x1d   :  { %v132_v11 = vmul.f32 32.0, %v1972_v10  ;;  %vm136_vm1 = vweird.f32 %v1972_v10  ;;  %210 = vmatpush.msra.mxu0 %v104_v29 }
  0x1f   :  { %v133_v12 = vsub.f32 1.0, %v132_v11 }
  0x21   :  { %v134_v13 = vmul.f32 %v1972_v10, %v133_v12 }
  0x23   :  { %129 = vadd.xlane.f32.xlu0 %v128_v8  ;;  %v135_v14 = vadd.f32 %v1972_v10, %v134_v13 }
  0x25   :  { %v2275_v15 = vsel %vm136_vm1, %v1972_v10, %v135_v14 }
  0x8e   :  { %v127_v16 = vpop.xlane.xlu0 %126 }
  0x8f   :  { %v138_v17 = vmul.f32 %v2275_v15, %v127_v16 }
  0x91   :  { %v140_v18 = vsub.f32 %v2267_v4, %v138_v17 }
  0x93   :  { %v142_v19 = vmul.f32 %v140_v18, %v140_v18  ;;  %v181_v56 = vmul.f32 %v180_v52, %v140_v18 }
  0x95   :  { %v144_v20 = vsel %vm124_vm0, %v142_v19, 0.0 }
  0x96   :  { %145 = vadd.xlane.f32.xlu1 %v144_v20  ;;  %v130_v21 = vpop.xlane.xlu0 %129 }
  0x97   :  { %v139_v22 = vmul.f32 %v2275_v15, %v130_v21 }
  0x99   :  { %v141_v23 = vsub.f32 %v2271_v7, %v139_v22 }
  0x9b   :  { %v143_v24 = vmul.f32 %v141_v23, %v141_v23  ;;  %v182_v63 = vmul.f32 %v180_v52, %v141_v23 }
  0x9d   :  { %v147_v25 = vsel %vm124_vm0, %v143_v24, 0.0 }
  0x9e   :  { %148 = vadd.xlane.f32.xlu1 %v147_v25 }
 0x109   :  { %v146_v30 = vpop.xlane.xlu1 %145 }
 0x10a   :  { %v150_v31 = vmul.f32 0.032258064, %v146_v30 }
 0x10c   :  { %1973 = vrsqrt.f32 %v150_v31  ;;  %vm159_vm2 = vcmp.eq.f32.partialorder %v150_v31, inf  ;;  %v162_v44 = vand.u32 2147483648, %v150_v31  ;;  %vm161_vm3 = vcmp.eq.f32.partialorder %v150_v31, 0.0 }
 0x111   :  { %v149_v32 = vpop.xlane.xlu1 %148 }
 0x112   :  { %v1974_v33 = vpop.eup %1973  ;;  %v151_v34 = vmul.f32 0.032258064, %v149_v32 }
 0x113   :  { %v153_v35 = vmul.f32 %v1974_v33, %v150_v31 }
 0x114   :  { %1975 = vrsqrt.f32 %v151_v34  ;;  %vm171_vm4 = vcmp.eq.f32.partialorder %v151_v34, inf  ;;  %v174_v54 = vand.u32 2147483648, %v151_v34  ;;  %vm173_vm5 = vcmp.eq.f32.partialorder %v151_v34, 0.0 }
 0x115   :  { %v154_v36 = vmul.f32 %v1974_v33, %v153_v35 }
 0x117   :  { %v155_v37 = vmul.f32 0.5, %v154_v36 }
 0x119   :  { %v156_v38 = vsub.f32 1.5, %v155_v37 }
 0x11a   :  { %v1976_v39 = vpop.eup %1975 }
 0x11b   :  { %v165_v40 = vmul.f32 %v1976_v39, %v151_v34  ;;  %v157_v41 = vmul.f32 %v1974_v33, %v156_v38 }
 0x11d   :  { %v158_v42 = vmul.f32 %v157_v41, %v150_v31  ;;  %v166_v43 = vmul.f32 %v1976_v39, %v165_v40 }
 0x11f   :  { %v160_v45 = vsel %vm159_vm2, %v150_v31, %v158_v42  ;;  %v167_v46 = vmul.f32 0.5, %v166_v43 }
 0x120   :  { %v163_v47 = vsel %vm161_vm3, %v162_v44, %v160_v45 }
 0x121   :  { %v176_v49 = vadd.f32 1e-06, %v163_v47  ;;  %v168_v50 = vsub.f32 1.5, %v167_v46 }
 0x123   :  { %1977 = vrcp.f32 %v176_v49  ;;  %v169_v51 = vmul.f32 %v1976_v39, %v168_v50 }
 0x125   :  { %v170_v53 = vmul.f32 %v169_v51, %v151_v34 }
 0x127   :  { %v172_v55 = vsel %vm171_vm4, %v151_v34, %v170_v53 }
 0x128   :  { %v175_v58 = vsel %vm173_vm5, %v174_v54, %v172_v55 }
 0x129   :  { %v1978_v59 = vpop.eup %1977  ;;  %v177_v60 = vadd.f32 1e-06, %v175_v58 }
 0x12a   :  { %v183_v61 = vmul.f32 %v1978_v59, %v181_v56 }
 0x12b   :  { %1979 = vrcp.f32 %v177_v60 }
 0x12c   :  { %v186_v62 = vadd.f32 %v185_v57, %v183_v61 }
 0x12e   :  { %1857 = vmatmul.msk.f32.vlgmr.msra.gmra.mxu0 %vm124_vm0, %v186_v62 }
 0x131   :  { %v1980_v0 = vpop.eup %1979 }
 0x132   :  { %v184_v1 = vmul.f32 %v1980_v0, %v182_v63 }
 0x134   :  { %v187_v2 = vadd.f32 %v185_v57, %v184_v1 }
 0x136   :  { %1858 = vmatmul.msk.f32.gmra.mxu0 %vm124_vm0, %v187_v2 }
 0x1ab   :  { %v212_v5 = vpop.f32.mrf.mxu0 }
 0x1ac   :  { %v2290_v6 = vadd.f32 %v212_v5, %v188_v3 }
 0x1ae   :  { %220 = vrot.lane.b32.xlu2 %v2290_v6, %s2211_s2 }
 0x1b3   :  { %v215_v8 = vpop.f32.mrf.mxu0 }
 0x1b4   :  { %v2294_v9 = vadd.f32 %v215_v8, %v188_v3 }
 0x1b6   :  { %224 = vrot.lane.b32.xlu2 %v2290_v6, %s2212_s4  ;;  %230 = vrot.lane.b32.xlu1 %v2294_v9, %s2213_s17 }
 0x1b7   :  { %222 = vrot.lane.b32.xlu0 %v2294_v9, %s2211_s2 }
 0x1be   :  { %228 = vrot.lane.b32.xlu2 %v2290_v6, %s2213_s17 }
 0x1c6   :  { %226 = vrot.lane.b32.xlu2 %v2294_v9, %s2212_s4 }
 0x1ce   :  { %232 = vrot.lane.b32.xlu2 %v2290_v6, %s2214_s18 }
 0x208   :  { %v2308_v10 = vpop.permute.xlu2 %220 }
 0x209   :  { %285 = vrot.lane.b32.xlu0 %v2308_v10, %s2214_s18  ;;  %v1938_v55 = vpack.i.bf16 %v2308_v10, %v2290_v6 }
 0x210   :  { %v2312_v11 = vpop.permute.xlu2 %224 }
 0x211   :  { %337 = vrot.lane.b32.xlu2 %v2312_v11, %s2214_s18 }
 0x218   :  { %v2316_v12 = vpop.permute.xlu2 %228 }
 0x219   :  { %259 = vrot.lane.b32.xlu2 %v2294_v9, %s2214_s18 }
 0x220   :  { %v2320_v13 = vpop.permute.xlu2 %226 }
 0x228   :  { %v233_v14 = vpop.permute.xlu2 %232  ;;  %v2322_v16 = vpop.permute.xlu1 %230 }
 0x229   :  { %v2324_v17 = vpop.permute.xlu0 %222  ;;  %1859 = vmatpush.xpose.msk.msra.mxu1 %vm234_vm6, %v233_v14  ;;  %415 = vrot.lane.b32.xlu0 %v2322_v16, %s2214_s18 }
 0x22a   :  { %311 = vrot.lane.b32.xlu1 %v2324_v17, %s2214_s18 }
 0x22c   :  { %1860 = vmatmul.msk.f32.vlgmr.msra.gmra.mxu1 %vm234_vm6, %v2290_v6 }
 0x231   :  { %363 = vrot.lane.b32.xlu0 %v2320_v13, %s2214_s18 }
 0x232   :  { %389 = vrot.lane.b32.xlu1 %v2316_v12, %s2214_s18 }
 0x26b   :  { %v338_v18 = vpop.permute.xlu2 %337 }
 0x26c   :  { %1867 = vmatpush.xpose.msk.msra.mxu2 %vm234_vm6, %v338_v18 }
 0x26f   :  { %1868 = vmatmul.msk.f32.vlgmr.msra.gmra.mxu2 %vm234_vm6, %v2312_v11 }
 0x273   :  { %v260_v19 = vpop.permute.xlu2 %259 }
 0x274   :  { %1861 = vmatpush.xpose.msk.msrb.mxu0 %vm234_vm6, %v260_v19  ;;  %v1948_v19 = vpack.i.bf16 %v2316_v12, %v2294_v9 }
 0x277   :  { %1862 = vmatmul.msk.f32.vlgmr.msrb.gmra.mxu0 %vm234_vm6, %v2294_v9 }
 0x27b   :  { %v286_v20 = vpop.permute.xlu0 %285 }
 0x27c   :  { %1863 = vmatpush.xpose.msk.msra.mxu3 %vm234_vm6, %v286_v20 }
 0x27f   :  { %1864 = vmatmul.msk.f32.vlgmr.msra.gmra.mxu3 %vm234_vm6, %v2308_v10 }
 0x29b   :  { %v416_v21 = vpop.permute.xlu0 %415 }
 0x29c   :  { %v312_v22 = vpop.permute.xlu1 %311  ;;  %1873 = vmatpush.xpose.msk.msrb.mxu2 %vm234_vm6, %v416_v21 }
 0x29d   :  { %1865 = vmatpush.xpose.msk.msrb.mxu1 %vm234_vm6, %v312_v22 }
 0x29f   :  { %1874 = vmatmul.msk.f32.vlgmr.msrb.gmra.mxu2 %vm234_vm6, %v2322_v16 }
 0x2a0   :  { %1866 = vmatmul.msk.f32.vlgmr.msrb.gmra.mxu1 %vm234_vm6, %v2324_v17 }
 0x2a3   :  { %v364_v23 = vpop.permute.xlu0 %363 }
 0x2a4   :  { %v390_v24 = vpop.permute.xlu1 %389  ;;  %1869 = vmatpush.xpose.msk.msrb.mxu3 %vm234_vm6, %v364_v23 }
 0x2a5   :  { %1871 = vmatpush.xpose.msk.msra.mxu1 %vm234_vm6, %v390_v24 }
 0x2a7   :  { %1870 = vmatmul.msk.f32.vlgmr.msrb.gmra.mxu3 %vm234_vm6, %v2320_v13 }
 0x2a8   :  { %1872 = vmatmul.msk.f32.vlgmr.msra.gmra.mxu1 %vm234_vm6, %v2316_v12 }
 0x2a9   :  { %v256_v25 = vpop.f32.mrf.mxu1 }
 0x2aa   :  { %v441_v26 = vmul.f32 0.35355338, %v256_v25 }
 0x2ac   :  { %v449_v27 = vsel %vm234_vm6, %v441_v26, -inf }
 0x2ad   :  { %450 = vmax.xlane.f32.xlu2 %v449_v27 }
 0x2f2   :  { %v360_v28 = vpop.f32.mrf.mxu2 }
 0x2f3   :  { %v445_v29 = vmul.f32 0.35355338, %v360_v28 }
 0x2f4   :  { %v282_v30 = vpop.f32.mrf.mxu0 }
 0x2f5   :  { %v442_v31 = vmul.f32 0.35355338, %v282_v30  ;;  %v461_v32 = vsel %vm234_vm6, %v445_v29, -inf }
 0x2f6   :  { %462 = vmax.xlane.f32.xlu0 %v461_v32 }
 0x2f7   :  { %v452_v33 = vsel %vm234_vm6, %v442_v31, -inf }
 0x2f8   :  { %453 = vmax.xlane.f32.xlu1 %v452_v33 }
 0x302   :  { %v308_v34 = vpop.f32.mrf.mxu3 }
 0x303   :  { %v443_v35 = vmul.f32 0.35355338, %v308_v34 }
 0x305   :  { %v455_v36 = vsel %vm234_vm6, %v443_v35, -inf }
 0x306   :  { %456 = vmax.xlane.f32.xlu1 %v455_v36 }
 0x31d   :  { %v334_v37 = vpop.f32.mrf.mxu1 }
 0x31e   :  { %v444_v38 = vmul.f32 0.35355338, %v334_v37 }
 0x320   :  { %v451_v39 = vpop.xlane.xlu2 %450  ;;  %v458_v40 = vsel %vm234_vm6, %v444_v38, -inf }
 0x321   :  { %v473_v41 = vsub.f32 %v441_v26, %v451_v39  ;;  %459 = vmax.xlane.f32.xlu2 %v458_v40  ;;  %v1943_v40 = vpack.i.bf16 %v2324_v17, %v2312_v11 }
 0x322   :  { %v438_v42 = vpop.f32.mrf.mxu2 }
 0x323   :  { %v481_v43 = vmul.f32 1.442695, %v473_v41  ;;  %v448_v44 = vmul.f32 0.35355338, %v438_v42 }
 0x325   :  { %1981 = vpow2.f32 %v481_v43  ;;  %v470_v45 = vsel %vm234_vm6, %v448_v44, -inf  ;;  %v412_v51 = vpop.f32.mrf.mxu1 }
 0x326   :  { %v447_v53 = vmul.f32 0.35355338, %v412_v51 }
 0x328   :  { %v467_v54 = vsel %vm234_vm6, %v447_v53, -inf }
 0x329   :  { %471 = vmax.xlane.f32.xlu2 %v470_v45 }
 0x32a   :  { %v386_v46 = vpop.f32.mrf.mxu3 }
 0x32b   :  { %v2364_v47 = vpop.eup %1981  ;;  %v446_v49 = vmul.f32 0.35355338, %v386_v46 }
 0x32c   :  { %v497_v50 = vsel %vm234_vm6, %v2364_v47, 0.0 }
 0x32d   :  { %498 = vadd.xlane.f32.xlu0 %v497_v50  ;;  %v464_v52 = vsel %vm234_vm6, %v446_v49, -inf }
 0x32e   :  { %465 = vmax.xlane.f32.xlu1 %v464_v52 }
 0x335   :  { %468 = vmax.xlane.f32.xlu0 %v467_v54 }
 0x341   :  { %1939 = vrot.lane.b32.xlu2 %v1938_v55, %s2215_s19 }
 0x369   :  { %v463_v56 = vpop.xlane.xlu0 %462 }
 0x36a   :  { %v477_v59 = vsub.f32 %v445_v29, %v463_v56 }
 0x36b   :  { %v454_v57 = vpop.xlane.xlu1 %453 }
 0x36c   :  { %v474_v58 = vsub.f32 %v442_v31, %v454_v57  ;;  %v489_v61 = vmul.f32 1.442695, %v477_v59 }
 0x36e   :  { %v483_v60 = vmul.f32 1.442695, %v474_v58 }
 0x370   :  { %1983 = vpow2.f32 %v483_v60 }
 0x371   :  { %1985 = vpow2.f32 %v489_v61 }
 0x376   :  { %v2373_v62 = vpop.eup %1983 }
 0x377   :  { %v500_v63 = vsel %vm234_vm6, %v2373_v62, 0.0  ;;  %v2377_v2 = vpop.eup %1985 }
 0x378   :  { %501 = vadd.xlane.f32.xlu1 %v500_v63  ;;  %v509_v5 = vsel %vm234_vm6, %v2377_v2, 0.0 }
 0x379   :  { %v457_v0 = vpop.xlane.xlu1 %456 }
 0x37a   :  { %v475_v1 = vsub.f32 %v443_v35, %v457_v0 }
 0x37c   :  { %v485_v3 = vmul.f32 1.442695, %v475_v1 }
 0x37e   :  { %1987 = vpow2.f32 %v485_v3 }
 0x380   :  { %510 = vadd.xlane.f32.xlu1 %v509_v5 }
 0x384   :  { %v1988_v6 = vpop.eup %1987 }
 0x385   :  { %v503_v8 = vsel %vm234_vm6, %v1988_v6, 0.0 }
 0x386   :  { %504 = vadd.xlane.f32.xlu2 %v503_v8 }
 0x394   :  { %v460_v10 = vpop.xlane.xlu2 %459 }
 0x395   :  { %v476_v14 = vsub.f32 %v444_v38, %v460_v10 }
 0x397   :  { %v487_v18 = vmul.f32 1.442695, %v476_v14 }
 0x399   :  { %1989 = vpow2.f32 %v487_v18 }
 0x39c   :  { %v472_v20 = vpop.xlane.xlu2 %471 }
 0x39d   :  { %v480_v21 = vsub.f32 %v448_v44, %v472_v20 }
 0x39e   :  { %1949 = vrot.lane.b32.xlu2 %v1948_v19, %s2215_s19 }
 0x39f   :  { %v2385_v22 = vpop.eup %1989  ;;  %v495_v23 = vmul.f32 1.442695, %v480_v21  ;;  %v111_v21 = vld [vmem:[#allocation6 + $0x38] sm:$0xff] }
 0x3a0   :  { %v506_v24 = vsel %vm234_vm6, %v2385_v22, 0.0  ;;  %v499_v25 = vpop.xlane.xlu0 %498 }
 0x3a1   :  { %1991 = vpow2.f32 %v495_v23  ;;  %507 = vadd.xlane.f32.xlu0 %v506_v24  ;;  %v466_v26 = vpop.xlane.xlu1 %465  ;;  %v109_v23 = vld [vmem:[#allocation6 + $0x28] sm:$0xff]  ;;  %v108_v24 = vld [vmem:[#allocation6 + $0x20] sm:$0xff] }
 0x3a2   :  { %1993 = vrcp.f32 %v499_v25  ;;  %v478_v27 = vsub.f32 %v446_v49, %v466_v26 }
 0x3a4   :  { %v491_v28 = vmul.f32 1.442695, %v478_v27  ;;  %v1940_v29 = vpop.permute.xlu2 %1939 }
 0x3a5   :  { %v1942_v30 = vunpack.i.h.bf16 %v1940_v29  ;;  %v1941_v9 = vunpack.i.l.bf16 %v1940_v29 }
 0x3a6   :  { %667 = vrot.lane.b32.xlu2 %v2320_v13, %s2215_s19  ;;  %1995 = vpow2.f32 %v491_v28 }
 0x3a7   :  { %v2391_v12 = vpop.eup %1991  ;;  %558 = vmatpush.msra.mxu3 %v1941_v9  ;;  %610 = vmatpush.msrb.mxu1 %v1942_v30 }
 0x3a8   :  { %v1994_v31 = vpop.eup %1993  ;;  %v518_v32 = vsel %vm234_vm6, %v2391_v12, 0.0  ;;  %v469_v33 = vpop.xlane.xlu0 %468 }
 0x3a9   :  { %v529_v34 = vmul.f32 %v1994_v31, %v2364_v47  ;;  %519 = vadd.xlane.f32.xlu1 %v518_v32  ;;  %v479_v35 = vsub.f32 %v447_v53, %v469_v33 }
 0x3ab   :  { %v493_v36 = vmul.f32 1.442695, %v479_v35  ;;  %1875 = vmatmul.msk.f32.vlgmr.msra.gmra.mxu3 %vm234_vm6, %v529_v34  ;;  %v808_v35 = vperm.slane %v2283_v48, 5 }
 0x3ac   :  { %v1996_v37 = vpop.eup %1995 }
 0x3ad   :  { %1997 = vpow2.f32 %v493_v36  ;;  %v512_v13 = vsel %vm234_vm6, %v1996_v37, 0.0 }
 0x3b1   :  { %513 = vadd.xlane.f32.xlu1 %v512_v13 }
 0x3b3   :  { %v1998_v38 = vpop.eup %1997 }
 0x3b4   :  { %v515_v39 = vsel %vm234_vm6, %v1998_v38, 0.0 }
 0x3b5   :  { %516 = vadd.xlane.f32.xlu0 %v515_v39 }
 0x3c9   :  { %1944 = vrot.lane.b32.xlu0 %v1943_v40, %s2215_s19 }
 0x3ca   :  { %719 = vrot.lane.b32.xlu1 %v2322_v16, %s2215_s19 }
 0x3eb   :  { %v502_v41 = vpop.xlane.xlu1 %501 }
 0x3ec   :  { %1999 = vrcp.f32 %v502_v41 }
 0x3f2   :  { %v2000_v43 = vpop.eup %1999 }
 0x3f3   :  { %v530_v50 = vmul.f32 %v2000_v43, %v2373_v62  ;;  %v511_v16 = vpop.xlane.xlu1 %510 }
 0x3f9   :  { %v505_v42 = vpop.xlane.xlu2 %504 }
 0x3fa   :  { %2001 = vrcp.f32 %v505_v42 }
 0x400   :  { %v2002_v44 = vpop.eup %2001 }
 0x401   :  { %v531_v45 = vmul.f32 %v2002_v44, %v1988_v6  ;;  %v1950_v46 = vpop.permute.xlu2 %1949 }
 0x402   :  { %v1952_v47 = vunpack.i.h.bf16 %v1950_v46  ;;  %v1951_v49 = vunpack.i.l.bf16 %v1950_v46 }
 0x403   :  { %1877 = vmatmul.msk.f32.vlgmr.msrb.gmra.mxu1 %vm234_vm6, %v531_v45 }
 0x404   :  { %584 = vmatpush.msra.mxu0 %v1951_v49  ;;  %714 = vmatpush.msra.mxu1 %v1952_v47 }
 0x405   :  { %1876 = vmatmul.msk.f32.vlgmr.msra.gmra.mxu0 %vm234_vm6, %v530_v50 }
 0x409   :  { %v668_v11 = vpop.permute.xlu2 %667 }
 0x40a   :  { %688 = vmatpush.msrb.mxu0 %v668_v11 }
 0x414   :  { %v508_v51 = vpop.xlane.xlu0 %507 }
 0x41c   :  { %v520_v17 = vpop.xlane.xlu1 %519 }
 0x424   :  { %v514_v52 = vpop.xlane.xlu1 %513 }
 0x425   :  { %2003 = vrcp.f32 %v514_v52 }
 0x428   :  { %v517_v53 = vpop.xlane.xlu0 %516 }
 0x429   :  { %2005 = vrcp.f32 %v517_v53  ;;  %v113_v53 = vld [vmem:[#allocation6 + $0x48] sm:$0xff] }
 0x42a   :  { %2007 = vrcp.f32 %v511_v16  ;;  %v115_v16 = vld [vmem:[#allocation6 + $0x58] sm:$0xff] }
 0x42b   :  { %v2004_v54 = vpop.eup %2003  ;;  %2009 = vrcp.f32 %v508_v51  ;;  %886 = vmatpush.msra.mxu0 %v115_v16  ;;  %v114_v51 = vld [vmem:[#allocation6 + $0x50] sm:$0xff] }
 0x42c   :  { %v534_v55 = vmul.f32 %v2004_v54, %v1996_v37  ;;  %2011 = vrcp.f32 %v520_v17  ;;  %v112_v54 = vld [vmem:[#allocation6 + $0x40] sm:$0xff] }
 0x42d   :  { %887 = vmatpush.msra.mxu0 %v114_v51 }
 0x42e   :  { %1880 = vmatmul.msk.f32.vlgmr.msrb.gmra.mxu0 %vm234_vm6, %v534_v55  ;;  %v560_v14 = vpop.f32.mrf.mxu3 }
 0x42f   :  { %v2006_v56 = vpop.eup %2005  ;;  %888 = vmatpush.msra.mxu0 %v113_v53 }
 0x430   :  { %v535_v57 = vmul.f32 %v2006_v56, %v1998_v38  ;;  %v2008_v58 = vpop.eup %2007 }
 0x431   :  { %v2010_v59 = vpop.eup %2009  ;;  %v533_v63 = vmul.f32 %v2008_v58, %v2377_v2  ;;  %889 = vmatpush.msra.mxu0 %v112_v54 }
 0x432   :  { %1881 = vmatmul.msk.f32.vlgmr.msra.gmra.mxu1 %vm234_vm6, %v535_v57  ;;  %v532_v0 = vmul.f32 %v2010_v59, %v2385_v22  ;;  %v2012_v3 = vpop.eup %2011  ;;  %v110_v22 = vld [vmem:[#allocation6 + $0x30] sm:$0xff] }
 0x433   :  { %v536_v5 = vmul.f32 %v2012_v3, %v2391_v12  ;;  %v859_v3 = vperm.slane %v2283_v48, 2 }
 0x43b   :  { %v1945_v60 = vpop.permute.xlu0 %1944 }
 0x43c   :  { %v1947_v61 = vunpack.i.h.bf16 %v1945_v60  ;;  %v1946_v62 = vunpack.i.l.bf16 %v1945_v60  ;;  %v720_v1 = vpop.permute.xlu1 %719 }
 0x43e   :  { %636 = vmatpush.msra.mxu2 %v1947_v61  ;;  %662 = vmatpush.msrb.mxu3 %v1946_v62 }
 0x43f   :  { %1878 = vmatmul.msk.f32.vlgmr.msra.gmra.mxu2 %vm234_vm6, %v532_v0  ;;  %1879 = vmatmul.msk.f32.vlgmr.msrb.gmra.mxu3 %vm234_vm6, %v533_v63 }
 0x440   :  { %740 = vmatpush.msrb.mxu2 %v720_v1  ;;  %795 = vmatpush.msra.mxu3 %v111_v21 }
 0x442   :  { %796 = vmatpush.msra.mxu3 %v110_v22 }
 0x444   :  { %797 = vmatpush.msra.mxu3 %v109_v23  ;;  %v120_v23 = vld [vmem:[#allocation6 + $0x80] sm:$0xff] }
 0x446   :  { %798 = vmatpush.msra.mxu3 %v108_v24 }
 0x447   :  { %1882 = vmatmul.msk.f32.vlgmr.msrb.gmra.mxu2 %vm234_vm6, %v536_v5 }
 0x480   :  { %v612_v6 = vpop.f32.mrf.mxu1 }
 0x481   :  { %747 = vrot.lane.b32.xlu0 %v612_v6, %s2206_s6 }
 0x482   :  { %v586_v8 = vpop.f32.mrf.mxu0 }
 0x4ab   :  { %v690_v10 = vpop.f32.mrf.mxu0 }
 0x4af   :  { %v716_v2 = vpop.f32.mrf.mxu1 }
 0x4b0   :  { %763 = vrot.lane.b32.xlu0 %v716_v2, %s2216_s20  ;;  %v864_v2 = vperm.slane %v2283_v48, 3 }
 0x4b8   :  { %757 = vrot.lane.b32.xlu0 %v690_v10, %s2217_s21 }
 0x4c2   :  { %v638_v18 = vpop.f32.mrf.mxu2  ;;  %v664_v19 = vpop.f32.mrf.mxu3 }
 0x4c3   :  { %755 = vrot.lane.b32.xlu2 %v664_v19, %s2217_s21 }
 0x4ca   :  { %v742_v20 = vpop.f32.mrf.mxu2 }
 0x4cb   :  { %765 = vrot.lane.b32.xlu1 %v742_v20, %s2216_s20  ;;  %749 = vrot.lane.b32.xlu2 %v638_v18, %s2206_s6  ;;  %v122_v18 = vld [vmem:[#allocation6 + $0x90] sm:$0xff]  ;;  %v121_v20 = vld [vmem:[#allocation6 + $0x88] sm:$0xff] }
 0x4f3   :  { %v748_v25 = vpop.permute.xlu0 %747 }
 0x4f4   :  { %v769_v27 = vsel %vm234_vm6, %v560_v14, %v748_v25  ;;  %v123_v14 = vld [vmem:[#allocation6 + $0x98] sm:$0xff] }
 0x4f5   :  { %914 = vmatpush.msrb.mxu1 %v123_v14  ;;  %v119_v25 = vld [vmem:[#allocation6 + $0x78] sm:$0xff] }
 0x4f7   :  { %915 = vmatpush.msrb.mxu1 %v122_v18 }
 0x4f9   :  { %916 = vmatpush.msrb.mxu1 %v121_v20 }
 0x4fb   :  { %917 = vmatpush.msrb.mxu1 %v120_v23 }
 0x4fd   :  { %918 = vmatpush.msrb.mxu1 %v119_v25 }
 0x51d   :  { %v756_v26 = vpop.permute.xlu2 %755 }
 0x51e   :  { %v772_v28 = vsel %vm771_vm7, %v769_v27, %v756_v26 }
 0x522   :  { %v764_v29 = vpop.permute.xlu0 %763 }
 0x523   :  { %v775_v30 = vsel %vm774_vm8, %v772_v28, %v764_v29 }
 0x524   :  { %1883 = vmatmul.msk.f32.vlgmr.msra.gmra.mxu3 %vm124_vm0, %v775_v30 }
 0x525   :  { %v750_v9 = vpop.permute.xlu2 %749 }
 0x526   :  { %v770_v31 = vsel %vm234_vm6, %v586_v8, %v750_v9 }
 0x52a   :  { %v758_v12 = vpop.permute.xlu0 %757 }
 0x52b   :  { %v773_v32 = vsel %vm771_vm7, %v770_v31, %v758_v12 }
 0x53d   :  { %v766_v33 = vpop.permute.xlu1 %765 }
 0x53e   :  { %v776_v34 = vsel %vm774_vm8, %v773_v32, %v766_v33 }
 0x53f   :  { %1884 = vmatmul.msk.f32.gmra.mxu3 %vm124_vm0, %v776_v34 }
 0x5a7   :  { %v800_v36 = vpop.f32.mrf.mxu3 }
 0x5a8   :  { %v806_v37 = vadd.f32 %v800_v36, %v2267_v4 }
 0x5aa   :  { %v2431_v13 = vadd.f32 %v808_v35, %v806_v37  ;;  %v118_v37 = vld [vmem:[#allocation6 + $0x70] sm:$0xff] }
 0x5ab   :  { %919 = vmatpush.msrb.mxu1 %v118_v37 }
 0x5ac   :  { %v811_v38 = vsel %vm124_vm0, %v2431_v13, 0.0 }
 0x5ad   :  { %812 = vadd.xlane.f32.xlu2 %v811_v38  ;;  %v117_v38 = vld [vmem:[#allocation6 + $0x68] sm:$0xff] }
 0x5ae   :  { %920 = vmatpush.msrb.mxu1 %v117_v38 }
 0x5c2   :  { %v803_v39 = vpop.f32.mrf.mxu3 }
 0x5c3   :  { %v807_v40 = vadd.f32 %v803_v39, %v2271_v7  ;;  %v116_v39 = vld [vmem:[#allocation6 + $0x60] sm:$0xff] }
 0x5c4   :  { %921 = vmatpush.msrb.mxu1 %v116_v39 }
 0x5c5   :  { %v2436_v41 = vadd.f32 %v808_v35, %v807_v40  ;;  %v867_v40 = vperm.slane %v2283_v48, 6 }
 0x5c7   :  { %v814_v42 = vsel %vm124_vm0, %v2436_v41, 0.0 }
 0x5c8   :  { %815 = vadd.xlane.f32.xlu0 %v814_v42 }
 0x620   :  { %v813_v43 = vpop.xlane.xlu2 %812 }
 0x621   :  { %v817_v44 = vmul.f32 %v813_v43, %v2275_v15 }
 0x623   :  { %v819_v4 = vsub.f32 %v2431_v13, %v817_v44 }
 0x625   :  { %v821_v45 = vmul.f32 %v819_v4, %v819_v4  ;;  %v860_v8 = vmul.f32 %v859_v3, %v819_v4 }
 0x627   :  { %v823_v46 = vsel %vm124_vm0, %v821_v45, 0.0 }
 0x628   :  { %824 = vadd.xlane.f32.xlu1 %v823_v46 }
 0x63b   :  { %v816_v47 = vpop.xlane.xlu0 %815 }
 0x63c   :  { %v818_v49 = vmul.f32 %v816_v47, %v2275_v15  ;;  %v931_v47 = vperm.slane %v2283_v48, 7 }
 0x63e   :  { %v2445_v7 = vsub.f32 %v2436_v41, %v818_v49 }
 0x640   :  { %v822_v50 = vmul.f32 %v2445_v7, %v2445_v7  ;;  %v861_v33 = vmul.f32 %v859_v3, %v2445_v7 }
 0x642   :  { %v826_v11 = vsel %vm124_vm0, %v822_v50, 0.0 }
 0x643   :  { %827 = vadd.xlane.f32.xlu2 %v826_v11 }
 0x69b   :  { %v825_v17 = vpop.xlane.xlu1 %824 }
 0x69c   :  { %v829_v52 = vmul.f32 0.032258064, %v825_v17 }
 0x69e   :  { %2013 = vrsqrt.f32 %v829_v52  ;;  %vm838_vm9 = vcmp.eq.f32.partialorder %v829_v52, inf  ;;  %v841_v62 = vand.u32 2147483648, %v829_v52  ;;  %vm840_vm10 = vcmp.eq.f32.partialorder %v829_v52, 0.0 }
 0x6a4   :  { %v2014_v55 = vpop.eup %2013 }
 0x6a5   :  { %v832_v56 = vmul.f32 %v2014_v55, %v829_v52 }
 0x6a7   :  { %v833_v57 = vmul.f32 %v2014_v55, %v832_v56 }
 0x6a9   :  { %v834_v58 = vmul.f32 0.5, %v833_v57 }
 0x6ab   :  { %v835_v59 = vsub.f32 1.5, %v834_v58 }
 0x6ad   :  { %v836_v60 = vmul.f32 %v2014_v55, %v835_v59 }
 0x6af   :  { %v837_v61 = vmul.f32 %v836_v60, %v829_v52  ;;  %v940_v60 = vld [vmem:[#allocation6 + $0xb8] sm:$0xff] }
 0x6b0   :  { %1032 = vmatpush.msra.mxu2 %v940_v60 }
 0x6b1   :  { %v839_v63 = vsel %vm838_vm9, %v829_v52, %v837_v61 }
 0x6b2   :  { %v842_v0 = vsel %vm840_vm10, %v841_v62, %v839_v63  ;;  %v939_v62 = vld [vmem:[#allocation6 + $0xb0] sm:$0xff] }
 0x6b3   :  { %v855_v1 = vadd.f32 1e-06, %v842_v0  ;;  %1033 = vmatpush.msra.mxu2 %v939_v62  ;;  %v938_v0 = vld [vmem:[#allocation6 + $0xa8] sm:$0xff] }
 0x6b5   :  { %2015 = vrcp.f32 %v855_v1  ;;  %1034 = vmatpush.msra.mxu2 %v938_v0  ;;  %v937_v1 = vld [vmem:[#allocation6 + $0xa0] sm:$0xff] }
 0x6b6   :  { %v828_v5 = vpop.xlane.xlu2 %827 }
 0x6b7   :  { %v830_v6 = vmul.f32 0.032258064, %v828_v5  ;;  %1035 = vmatpush.msra.mxu2 %v937_v1 }
 0x6b9   :  { %2017 = vrsqrt.f32 %v830_v6  ;;  %vm850_vm11 = vcmp.eq.f32.partialorder %v830_v6, inf  ;;  %v853_v9 = vand.u32 2147483648, %v830_v6  ;;  %vm852_vm12 = vcmp.eq.f32.partialorder %v830_v6, 0.0 }
 0x6bb   :  { %v2016_v10 = vpop.eup %2015 }
 0x6bc   :  { %v862_v19 = vmul.f32 %v2016_v10, %v860_v8 }
 0x6be   :  { %v865_v21 = vadd.f32 %v864_v2, %v862_v19 }
 0x6bf   :  { %v2018_v22 = vpop.eup %2017 }
 0x6c0   :  { %v844_v24 = vmul.f32 %v2018_v22, %v830_v6  ;;  %1885 = vmatmul.msk.f32.vlgmr.msra.gmra.mxu0 %vm124_vm0, %v865_v21  ;;  %v2475_v21 = vld [vmem:[#allocation7 + $0x8] sm:$0xff] }
 0x6c1   :  { %v1005_v23 = vperm.slane %v2475_v21, 0 }
 0x6c2   :  { %v845_v26 = vmul.f32 %v2018_v22, %v844_v24 }
 0x6c4   :  { %v846_v27 = vmul.f32 0.5, %v845_v26 }
 0x6c6   :  { %v847_v28 = vsub.f32 1.5, %v846_v27  ;;  %v1010_v27 = vperm.slane %v2475_v21, 1 }
 0x6c8   :  { %v848_v29 = vmul.f32 %v2018_v22, %v847_v28 }
 0x6ca   :  { %v849_v30 = vmul.f32 %v848_v29, %v830_v6 }
 0x6cc   :  { %v851_v12 = vsel %vm850_vm11, %v830_v6, %v849_v30 }
 0x6cd   :  { %v854_v31 = vsel %vm852_vm12, %v853_v9, %v851_v12 }
 0x6ce   :  { %v856_v32 = vadd.f32 1e-06, %v854_v31 }
 0x6d0   :  { %2019 = vrcp.f32 %v856_v32 }
 0x6d6   :  { %v2020_v34 = vpop.eup %2019 }
 0x6d7   :  { %v863_v35 = vmul.f32 %v2020_v34, %v861_v33 }
 0x6d9   :  { %v866_v36 = vadd.f32 %v864_v2, %v863_v35 }
 0x6db   :  { %1886 = vmatmul.msk.f32.gmra.mxu0 %vm124_vm0, %v866_v36 }
 0x73d   :  { %v891_v42 = vpop.f32.mrf.mxu0 }
 0x73e   :  { %v892_v43 = vadd.f32 %v891_v42, %v867_v40 }
 0x740   :  { %v897_v44 = vmax.f32 %v892_v43, 0.0 }
 0x742   :  { %1887 = vmatmul.msk.f32.vlgmr.msrb.gmra.mxu1 %vm899_vm13, %v897_v44 }
 0x758   :  { %v894_v4 = vpop.f32.mrf.mxu0 }
 0x759   :  { %v895_v45 = vadd.f32 %v894_v4, %v867_v40  ;;  %v1013_v4 = vperm.slane %v2475_v21, 4 }
 0x75b   :  { %v898_v46 = vmax.f32 %v895_v45, 0.0 }
 0x75d   :  { %1888 = vmatmul.msk.f32.gmra.mxu1 %vm899_vm13, %v898_v46 }
 0x7bf   :  { %v923_v49 = vpop.f32.mrf.mxu1 }
 0x7c0   :  { %v929_v7 = vadd.f32 %v923_v49, %v2431_v13 }
 0x7c2   :  { %v2460_v50 = vadd.f32 %v931_v47, %v929_v7 }
 0x7c4   :  { %v957_v11 = vsel %vm124_vm0, %v2460_v50, 0.0 }
 0x7c5   :  { %958 = vadd.xlane.f32.xlu0 %v957_v11 }
 0x7da   :  { %v926_v16 = vpop.f32.mrf.mxu1 }
 0x7db   :  { %v930_v17 = vadd.f32 %v926_v16, %v2436_v41 }
 0x7dd   :  { %v2465_v51 = vadd.f32 %v931_v47, %v930_v17 }
 0x7df   :  { %v960_v52 = vsel %vm124_vm0, %v2465_v51, 0.0 }
 0x7e0   :  { %961 = vadd.xlane.f32.xlu1 %v960_v52 }
 0x838   :  { %v959_v53 = vpop.xlane.xlu0 %958 }
 0x839   :  { %v963_v48 = vmul.f32 %v959_v53, %v2275_v15 }
 0x83b   :  { %v965_v13 = vsub.f32 %v2460_v50, %v963_v48 }
 0x83d   :  { %v967_v54 = vmul.f32 %v965_v13, %v965_v13  ;;  %v1006_v26 = vmul.f32 %v1005_v23, %v965_v13 }
 0x83f   :  { %v969_v55 = vsel %vm124_vm0, %v967_v54, 0.0 }
 0x840   :  { %970 = vadd.xlane.f32.xlu2 %v969_v55 }
 0x853   :  { %v962_v56 = vpop.xlane.xlu1 %961 }
 0x854   :  { %v964_v57 = vmul.f32 %v962_v56, %v2275_v15 }
 0x856   :  { %v966_v41 = vsub.f32 %v2465_v51, %v964_v57 }
 0x858   :  { %v968_v58 = vmul.f32 %v966_v41, %v966_v41  ;;  %v1007_v40 = vmul.f32 %v1005_v23, %v966_v41 }
 0x85a   :  { %v972_v59 = vsel %vm124_vm0, %v968_v58, 0.0 }
 0x85b   :  { %973 = vadd.xlane.f32.xlu0 %v972_v59 }
 0x8b3   :  { %v971_v61 = vpop.xlane.xlu2 %970 }
 0x8b4   :  { %v975_v63 = vmul.f32 0.032258064, %v971_v61 }
 0x8b6   :  { %2021 = vrsqrt.f32 %v975_v63  ;;  %vm984_vm14 = vcmp.eq.f32.partialorder %v975_v63, inf  ;;  %v987_v18 = vand.u32 2147483648, %v975_v63  ;;  %vm986_vm15 = vcmp.eq.f32.partialorder %v975_v63, 0.0 }
 0x8bc   :  { %v2022_v3 = vpop.eup %2021 }
 0x8bd   :  { %v978_v5 = vmul.f32 %v2022_v3, %v975_v63 }
 0x8bf   :  { %v979_v6 = vmul.f32 %v2022_v3, %v978_v5 }
 0x8c1   :  { %v980_v8 = vmul.f32 0.5, %v979_v6 }
 0x8c3   :  { %v981_v2 = vsub.f32 1.5, %v980_v8 }
 0x8c5   :  { %v982_v10 = vmul.f32 %v2022_v3, %v981_v2 }
 0x8c7   :  { %v983_v14 = vmul.f32 %v982_v10, %v975_v63 }
 0x8c9   :  { %v985_v19 = vsel %vm984_vm14, %v975_v63, %v983_v14 }
 0x8ca   :  { %v988_v20 = vsel %vm986_vm15, %v987_v18, %v985_v19 }
 0x8cb   :  { %v1001_v22 = vadd.f32 1e-06, %v988_v20 }
 0x8cd   :  { %2023 = vrcp.f32 %v1001_v22 }
 0x8ce   :  { %v974_v24 = vpop.xlane.xlu0 %973 }
 0x8cf   :  { %v976_v25 = vmul.f32 0.032258064, %v974_v24 }
 0x8d1   :  { %2025 = vrsqrt.f32 %v976_v25  ;;  %vm996_vm1 = vcmp.eq.f32.partialorder %v976_v25, inf  ;;  %v999_v36 = vand.u32 2147483648, %v976_v25  ;;  %vm998_vm2 = vcmp.eq.f32.partialorder %v976_v25, 0.0 }
 0x8d3   :  { %v2024_v28 = vpop.eup %2023 }
 0x8d4   :  { %v1008_v29 = vmul.f32 %v2024_v28, %v1006_v26 }
 0x8d6   :  { %v1011_v30 = vadd.f32 %v1010_v27, %v1008_v29 }
 0x8d7   :  { %v2026_v9 = vpop.eup %2025 }
 0x8d8   :  { %v990_v12 = vmul.f32 %v2026_v9, %v976_v25  ;;  %1889 = vmatmul.msk.f32.vlgmr.msra.gmra.mxu2 %vm124_vm0, %v1011_v30 }
 0x8da   :  { %v991_v31 = vmul.f32 %v2026_v9, %v990_v12 }
 0x8dc   :  { %v992_v32 = vmul.f32 0.5, %v991_v31 }
 0x8de   :  { %v993_v33 = vsub.f32 1.5, %v992_v32 }
 0x8e0   :  { %v994_v34 = vmul.f32 %v2026_v9, %v993_v33 }
 0x8e2   :  { %v995_v35 = vmul.f32 %v994_v34, %v976_v25 }
 0x8e4   :  { %v997_v37 = vsel %vm996_vm1, %v976_v25, %v995_v35 }
 0x8e5   :  { %v1000_v38 = vsel %vm998_vm2, %v999_v36, %v997_v37 }
 0x8e6   :  { %v1002_v39 = vadd.f32 1e-06, %v1000_v38 }
 0x8e8   :  { %2027 = vrcp.f32 %v1002_v39 }
 0x8ee   :  { %v2028_v42 = vpop.eup %2027 }
 0x8ef   :  { %v1009_v43 = vmul.f32 %v2028_v42, %v1007_v40 }
 0x8f1   :  { %v1012_v44 = vadd.f32 %v1010_v27, %v1009_v43 }
 0x8f3   :  { %1890 = vmatmul.msk.f32.gmra.mxu2 %vm124_vm0, %v1012_v44 }
 0x95b   :  { %v1037_v45 = vpop.f32.mrf.mxu2 }
 0x95c   :  { %v2482_v46 = vadd.f32 %v1037_v45, %v1013_v4 }
 0x95e   :  { %1053 = vrot.lane.b32.xlu0 %v2482_v46, %s2213_s17  ;;  %1045 = vrot.lane.b32.xlu1 %v2482_v46, %s2211_s2 }
 0x966   :  { %1049 = vrot.lane.b32.xlu0 %v2482_v46, %s2212_s4 }
 0x976   :  { %v1040_v47 = vpop.f32.mrf.mxu2 }
 0x977   :  { %v2490_v49 = vadd.f32 %v1040_v47, %v1013_v4 }
 0x979   :  { %1047 = vrot.lane.b32.xlu2 %v2490_v49, %s2211_s2  ;;  %1055 = vrot.lane.b32.xlu1 %v2490_v49, %s2213_s17 }
 0x981   :  { %1051 = vrot.lane.b32.xlu2 %v2490_v49, %s2212_s4  ;;  %1057 = vrot.lane.b32.xlu1 %v2482_v46, %s2214_s18 }
 0x9d0   :  { %v2500_v7 = vpop.permute.xlu0 %1053  ;;  %v2502_v11 = vpop.permute.xlu1 %1045 }
 0x9d1   :  { %1213 = vrot.lane.b32.xlu1 %v2500_v7, %s2214_s18  ;;  %1109 = vrot.lane.b32.xlu0 %v2502_v11, %s2214_s18  ;;  %v1953_v32 = vpack.i.bf16 %v2482_v46, %v2502_v11 }
 0x9d3   :  { %v2508_v16 = vpop.permute.xlu2 %1047 }
 0x9d4   :  { %1135 = vrot.lane.b32.xlu2 %v2508_v16, %s2214_s18 }
 0x9d8   :  { %v2512_v17 = vpop.permute.xlu0 %1049 }
 0x9d9   :  { %1161 = vrot.lane.b32.xlu1 %v2512_v17, %s2214_s18  ;;  %1083 = vrot.lane.b32.xlu0 %v2490_v49, %s2214_s18  ;;  %v1963_v33 = vpack.i.bf16 %v2512_v17, %v2490_v49 }
 0x9db   :  { %v2518_v52 = vpop.permute.xlu2 %1051 }
 0x9e1   :  { %1187 = vrot.lane.b32.xlu0 %v2518_v52, %s2214_s18 }
 0x9eb   :  { %v2522_v53 = vpop.permute.xlu1 %1055 }
 0x9ec   :  { %1239 = vrot.lane.b32.xlu2 %v2522_v53, %s2214_s18 }
 0x9f3   :  { %v1058_v48 = vpop.permute.xlu1 %1057 }
 0x9f4   :  { %1891 = vmatpush.xpose.msk.msrb.mxu3 %vm234_vm6, %v1058_v48 }
 0x9f7   :  { %1892 = vmatmul.msk.f32.vlgmr.msrb.gmra.mxu3 %vm234_vm6, %v2482_v46 }
 0xa2e   :  { %v1136_v13 = vpop.permute.xlu2 %1135 }
 0xa2f   :  { %1897 = vmatpush.xpose.msk.msra.mxu3 %vm234_vm6, %v1136_v13 }
 0xa32   :  { %1898 = vmatmul.msk.f32.vlgmr.msra.gmra.mxu3 %vm234_vm6, %v2508_v16 }
 0xa43   :  { %v1110_v54 = vpop.permute.xlu0 %1109  ;;  %v1214_v55 = vpop.permute.xlu1 %1213 }
 0xa44   :  { %1895 = vmatpush.xpose.msk.msrb.mxu2 %vm234_vm6, %v1110_v54 }
 0xa46   :  { %v1240_v56 = vpop.permute.xlu2 %1239 }
 0xa47   :  { %1896 = vmatmul.msk.f32.vlgmr.msrb.gmra.mxu2 %vm234_vm6, %v2502_v11  ;;  %1905 = vmatpush.xpose.msk.msrb.mxu3 %vm234_vm6, %v1240_v56 }
 0xa48   :  { %1903 = vmatpush.xpose.msk.msra.mxu2 %vm234_vm6, %v1214_v55 }
 0xa4a   :  { %1906 = vmatmul.msk.f32.vlgmr.msrb.gmra.mxu3 %vm234_vm6, %v2522_v53 }
 0xa4b   :  { %v1084_v57 = vpop.permute.xlu0 %1083  ;;  %v1162_v41 = vpop.permute.xlu1 %1161 }
 0xa4c   :  { %1893 = vmatpush.xpose.msk.msrb.mxu0 %vm234_vm6, %v1084_v57 }
 0xa4f   :  { %1894 = vmatmul.msk.f32.vlgmr.msrb.gmra.mxu0 %vm234_vm6, %v2490_v49  ;;  %1904 = vmatmul.msk.f32.vlgmr.msra.gmra.mxu2 %vm234_vm6, %v2500_v7 }
 0xa50   :  { %1899 = vmatpush.xpose.msk.msra.mxu0 %vm234_vm6, %v1162_v41 }
 0xa53   :  { %v1188_v58 = vpop.permute.xlu0 %1187 }
 0xa54   :  { %1901 = vmatpush.xpose.msk.msra.mxu1 %vm234_vm6, %v1188_v58 }
 0xa57   :  { %1900 = vmatmul.msk.f32.vlgmr.msra.gmra.mxu0 %vm234_vm6, %v2512_v17  ;;  %1902 = vmatmul.msk.f32.vlgmr.msra.gmra.mxu1 %vm234_vm6, %v2518_v52 }
 0xa7a   :  { %v1080_v59 = vpop.f32.mrf.mxu3 }
 0xa7b   :  { %v1265_v60 = vmul.f32 0.35355338, %v1080_v59 }
 0xa7d   :  { %v1273_v61 = vsel %vm234_vm6, %v1265_v60, -inf }
 0xa7e   :  { %1274 = vmax.xlane.f32.xlu1 %v1273_v61 }
 0xab5   :  { %v1158_v5 = vpop.f32.mrf.mxu3 }
 0xab6   :  { %v1268_v26 = vmul.f32 0.35355338, %v1158_v5 }
 0xab8   :  { %v1282_v28 = vsel %vm234_vm6, %v1268_v26, -inf }
 0xaca   :  { %v1132_v62 = vpop.f32.mrf.mxu2 }
 0xacb   :  { %v1267_v63 = vmul.f32 0.35355338, %v1132_v62 }
 0xacc   :  { %v1106_v0 = vpop.f32.mrf.mxu0 }
 0xacd   :  { %v1266_v1 = vmul.f32 0.35355338, %v1106_v0  ;;  %v1279_v3 = vsel %vm234_vm6, %v1267_v63, -inf  ;;  %v1262_v22 = vpop.f32.mrf.mxu3 }
 0xace   :  { %1280 = vmax.xlane.f32.xlu2 %v1279_v3  ;;  %v1272_v25 = vmul.f32 0.35355338, %v1262_v22 }
 0xacf   :  { %v1276_v6 = vsel %vm234_vm6, %v1266_v1, -inf }
 0xad0   :  { %1277 = vmax.xlane.f32.xlu1 %v1276_v6  ;;  %v1294_v27 = vsel %vm234_vm6, %v1272_v25, -inf }
 0xad2   :  { %v1236_v8 = vpop.f32.mrf.mxu2 }
 0xad3   :  { %v1271_v2 = vmul.f32 0.35355338, %v1236_v8 }
 0xad4   :  { %v1184_v10 = vpop.f32.mrf.mxu0  ;;  %v1210_v14 = vpop.f32.mrf.mxu1 }
 0xad5   :  { %v1269_v18 = vmul.f32 0.35355338, %v1184_v10  ;;  %v1270_v19 = vmul.f32 0.35355338, %v1210_v14  ;;  %v1291_v20 = vsel %vm234_vm6, %v1271_v2, -inf  ;;  %v1958_v10 = vpack.i.bf16 %v2500_v7, %v2508_v16 }
 0xad6   :  { %1292 = vmax.xlane.f32.xlu2 %v1291_v20 }
 0xad7   :  { %v1288_v23 = vsel %vm234_vm6, %v1270_v19, -inf  ;;  %v1285_v24 = vsel %vm234_vm6, %v1269_v18, -inf }
 0xad8   :  { %1289 = vmax.xlane.f32.xlu1 %v1288_v23  ;;  %1286 = vmax.xlane.f32.xlu0 %v1285_v24 }
 0xade   :  { %1295 = vmax.xlane.f32.xlu2 %v1294_v27 }
 0xae0   :  { %1283 = vmax.xlane.f32.xlu0 %v1282_v28 }
 0xaf1   :  { %v1275_v29 = vpop.xlane.xlu1 %1274 }
 0xaf2   :  { %v1297_v30 = vsub.f32 %v1265_v60, %v1275_v29 }
 0xaf4   :  { %v1305_v9 = vmul.f32 1.442695, %v1297_v30 }
 0xaf6   :  { %2029 = vpow2.f32 %v1305_v9 }
 0xafc   :  { %v2558_v12 = vpop.eup %2029 }
 0xafd   :  { %v1321_v31 = vsel %vm234_vm6, %v2558_v12, 0.0 }
 0xafe   :  { %1322 = vadd.xlane.f32.xlu2 %v1321_v31 }
 0xb16   :  { %1954 = vrot.lane.b32.xlu2 %v1953_v32, %s2215_s19 }
 0xb1e   :  { %1964 = vrot.lane.b32.xlu2 %v1963_v33, %s2215_s19 }
 0xb26   :  { %1491 = vrot.lane.b32.xlu2 %v2518_v52, %s2215_s19 }
 0xb41   :  { %v1281_v37 = vpop.xlane.xlu2 %1280 }
 0xb42   :  { %v1299_v42 = vsub.f32 %v1267_v63, %v1281_v37 }
 0xb43   :  { %v1278_v34 = vpop.xlane.xlu1 %1277 }
 0xb44   :  { %v1298_v35 = vsub.f32 %v1266_v1, %v1278_v34  ;;  %v1309_v45 = vmul.f32 1.442695, %v1299_v42 }
 0xb46   :  { %v1307_v36 = vmul.f32 1.442695, %v1298_v35 }
 0xb48   :  { %2031 = vpow2.f32 %v1307_v36 }
 0xb49   :  { %v1293_v4 = vpop.xlane.xlu2 %1292 }
 0xb4a   :  { %v1303_v11 = vsub.f32 %v1271_v2, %v1293_v4 }
 0xb4b   :  { %v1287_v38 = vpop.xlane.xlu0 %1286  ;;  %v1290_v46 = vpop.xlane.xlu1 %1289 }
 0xb4c   :  { %v1301_v39 = vsub.f32 %v1269_v18, %v1287_v38  ;;  %v1302_v52 = vsub.f32 %v1270_v19, %v1290_v46  ;;  %v1317_v54 = vmul.f32 1.442695, %v1303_v11 }
 0xb4e   :  { %v2570_v40 = vpop.eup %2031  ;;  %v1313_v43 = vmul.f32 1.442695, %v1301_v39  ;;  %v1315_v55 = vmul.f32 1.442695, %v1302_v52 }
 0xb4f   :  { %v1324_v44 = vsel %vm234_vm6, %v2570_v40, 0.0 }
 0xb50   :  { %2033 = vpow2.f32 %v1313_v43  ;;  %1325 = vadd.xlane.f32.xlu1 %v1324_v44 }
 0xb51   :  { %2035 = vpow2.f32 %v1309_v45  ;;  %v1296_v56 = vpop.xlane.xlu2 %1295 }
 0xb52   :  { %v1304_v58 = vsub.f32 %v1272_v25, %v1296_v56  ;;  %v941_v56 = vld [vmem:[#allocation6 + $0xc0] sm:$0xff] }
 0xb53   :  { %v1284_v47 = vpop.xlane.xlu0 %1283 }
 0xb54   :  { %v1300_v49 = vsub.f32 %v1268_v26, %v1284_v47  ;;  %v1319_v61 = vmul.f32 1.442695, %v1304_v58 }
 0xb56   :  { %v2034_v17 = vpop.eup %2033  ;;  %v1311_v48 = vmul.f32 1.442695, %v1300_v49 }
 0xb57   :  { %v1333_v13 = vsel %vm234_vm6, %v2034_v17, 0.0  ;;  %v2036_v57 = vpop.eup %2035 }
 0xb58   :  { %2037 = vpow2.f32 %v1311_v48  ;;  %1334 = vadd.xlane.f32.xlu0 %v1333_v13  ;;  %v1327_v59 = vsel %vm234_vm6, %v2036_v57, 0.0  ;;  %v944_v13 = vld [vmem:[#allocation6 + $0xd8] sm:$0xff] }
 0xb59   :  { %2039 = vpow2.f32 %v1317_v54  ;;  %v943_v54 = vld [vmem:[#allocation6 + $0xd0] sm:$0xff] }
 0xb5a   :  { %2041 = vpow2.f32 %v1315_v55  ;;  %v942_v55 = vld [vmem:[#allocation6 + $0xc8] sm:$0xff] }
 0xb5b   :  { %2043 = vpow2.f32 %v1319_v61 }
 0xb5e   :  { %v2575_v41 = vpop.eup %2037 }
 0xb5f   :  { %v1330_v60 = vsel %vm234_vm6, %v2575_v41, 0.0  ;;  %v2040_v62 = vpop.eup %2039 }
 0xb60   :  { %1328 = vadd.xlane.f32.xlu0 %v1327_v59  ;;  %1331 = vadd.xlane.f32.xlu1 %v1330_v60  ;;  %v2042_v63 = vpop.eup %2041  ;;  %v1339_v0 = vsel %vm234_vm6, %v2040_v62, 0.0 }
 0xb61   :  { %v1336_v1 = vsel %vm234_vm6, %v2042_v63, 0.0  ;;  %v2044_v3 = vpop.eup %2043 }
 0xb62   :  { %v1342_v5 = vsel %vm234_vm6, %v2044_v3, 0.0 }
 0xb68   :  { %1340 = vadd.xlane.f32.xlu0 %v1339_v0  ;;  %1337 = vadd.xlane.f32.xlu1 %v1336_v1 }
 0xb70   :  { %1343 = vadd.xlane.f32.xlu1 %v1342_v5 }
 0xb71   :  { %v1323_v6 = vpop.xlane.xlu2 %1322 }
 0xb72   :  { %2045 = vrcp.f32 %v1323_v6  ;;  %v1630_v6 = vperm.slane %v2475_v21, 5 }
 0xb78   :  { %v2046_v8 = vpop.eup %2045 }
 0xb79   :  { %v1955_v2 = vpop.permute.xlu2 %1954  ;;  %v1353_v19 = vmul.f32 %v2046_v8, %v2558_v12 }
 0xb7a   :  { %v1957_v14 = vunpack.i.h.bf16 %v1955_v2  ;;  %v1956_v18 = vunpack.i.l.bf16 %v1955_v2 }
 0xb7c   :  { %1959 = vrot.lane.b32.xlu0 %v1958_v10, %s2215_s19  ;;  %1382 = vmatpush.msrb.mxu0 %v1957_v14 }
 0xb7d   :  { %1434 = vmatpush.msrb.mxu2 %v1956_v18  ;;  %1907 = vmatmul.msk.f32.vlgmr.msrb.gmra.mxu0 %vm234_vm6, %v1353_v19 }
 0xb81   :  { %v1965_v20 = vpop.permute.xlu2 %1964 }
 0xb82   :  { %v1967_v22 = vunpack.i.h.bf16 %v1965_v20  ;;  %v1966_v23 = vunpack.i.l.bf16 %v1965_v20 }
 0xb84   :  { %1408 = vmatpush.msrb.mxu1 %v1966_v23  ;;  %1486 = vmatpush.msra.mxu0 %v1967_v22 }
 0xb86   :  { %1617 = vmatpush.msrb.mxu0 %v944_v13 }
 0xb88   :  { %1618 = vmatpush.msrb.mxu0 %v943_v54  ;;  %v1681_v54 = vperm.slane %v2475_v21, 2 }
 0xb89   :  { %v1492_v24 = vpop.permute.xlu2 %1491  ;;  %1543 = vrot.lane.b32.xlu1 %v2522_v53, %s2215_s19 }
 0xb8a   :  { %1512 = vmatpush.msra.mxu1 %v1492_v24  ;;  %1619 = vmatpush.msrb.mxu0 %v942_v55 }
 0xb8c   :  { %1620 = vmatpush.msrb.mxu0 %v941_v56 }
 0xbc3   :  { %v1326_v7 = vpop.xlane.xlu1 %1325 }
 0xbc4   :  { %2047 = vrcp.f32 %v1326_v7 }
 0xbca   :  { %v2048_v16 = vpop.eup %2047 }
 0xbcb   :  { %v1354_v25 = vmul.f32 %v2048_v16, %v2570_v40  ;;  %v1335_v26 = vpop.xlane.xlu0 %1334 }
 0xbcc   :  { %2049 = vrcp.f32 %v1335_v26 }
 0xbcd   :  { %1908 = vmatmul.msk.f32.vlgmr.msrb.gmra.mxu1 %vm234_vm6, %v1354_v25 }
 0xbd2   :  { %v2050_v27 = vpop.eup %2049 }
 0xbd3   :  { %v1357_v28 = vmul.f32 %v2050_v27, %v2034_v17  ;;  %v1329_v29 = vpop.xlane.xlu0 %1328  ;;  %v1332_v30 = vpop.xlane.xlu1 %1331 }
 0xbd4   :  { %2051 = vrcp.f32 %v1329_v29  ;;  %v948_v29 = vld [vmem:[#allocation6 + $0xf8] sm:$0xff] }
 0xbd5   :  { %1911 = vmatmul.msk.f32.vlgmr.msra.gmra.mxu0 %vm234_vm6, %v1357_v28  ;;  %1708 = vmatpush.msrb.mxu1 %v948_v29 }
 0xbda   :  { %v2052_v9 = vpop.eup %2051 }
 0xbdb   :  { %v1355_v12 = vmul.f32 %v2052_v9, %v2036_v57  ;;  %v1338_v53 = vpop.xlane.xlu1 %1337  ;;  %v1341_v32 = vpop.xlane.xlu0 %1340  ;;  %v946_v9 = vld [vmem:[#allocation6 + $0xe8] sm:$0xff] }
 0xbdc   :  { %2053 = vrcp.f32 %v1338_v53 }
 0xbdd   :  { %1909 = vmatmul.msk.f32.vlgmr.msrb.gmra.mxu2 %vm234_vm6, %v1355_v12  ;;  %2055 = vrcp.f32 %v1332_v30  ;;  %v947_v30 = vld [vmem:[#allocation6 + $0xf0] sm:$0xff]  ;;  %v945_v12 = vld [vmem:[#allocation6 + $0xe0] sm:$0xff] }
 0xbde   :  { %2057 = vrcp.f32 %v1341_v32  ;;  %1709 = vmatpush.msrb.mxu1 %v947_v30 }
 0xbe0   :  { %1710 = vmatpush.msrb.mxu1 %v946_v9 }
 0xbe2   :  { %v2054_v31 = vpop.eup %2053  ;;  %1711 = vmatpush.msrb.mxu1 %v945_v12 }
 0xbe3   :  { %v1358_v33 = vmul.f32 %v2054_v31, %v2042_v63  ;;  %v2056_v34 = vpop.eup %2055  ;;  %v1344_v37 = vpop.xlane.xlu1 %1343 }
 0xbe4   :  { %v2058_v35 = vpop.eup %2057  ;;  %v1356_v40 = vmul.f32 %v2056_v34, %v2575_v41  ;;  %2059 = vrcp.f32 %v1344_v37 }
 0xbe5   :  { %1912 = vmatmul.msk.f32.vlgmr.msra.gmra.mxu1 %vm234_vm6, %v1358_v33  ;;  %v1359_v42 = vmul.f32 %v2058_v35, %v2040_v62 }
 0xbea   :  { %v2060_v43 = vpop.eup %2059 }
 0xbeb   :  { %v1360_v44 = vmul.f32 %v2060_v43, %v2044_v3  ;;  %v954_v43 = vld [vmem:[#allocation6 + $0x128] sm:$0xff] }
 0xbee   :  { %v1960_v36 = vpop.permute.xlu0 %1959 }
 0xbef   :  { %v1962_v38 = vunpack.i.h.bf16 %v1960_v36  ;;  %v1961_v39 = vunpack.i.l.bf16 %v1960_v36 }
 0xbf1   :  { %1460 = vmatpush.msra.mxu3 %v1961_v39  ;;  %1538 = vmatpush.msra.mxu2 %v1962_v38  ;;  %v956_v39 = vld [vmem:[#allocation6 + $0x138] sm:$0xff] }
 0xbf2   :  { %1910 = vmatmul.msk.f32.vlgmr.msra.gmra.mxu3 %vm234_vm6, %v1356_v40  ;;  %1913 = vmatmul.msk.f32.vlgmr.msra.gmra.mxu2 %vm234_vm6, %v1359_v42  ;;  %v955_v40 = vld [vmem:[#allocation6 + $0x130] sm:$0xff] }
 0xbf3   :  { %1735 = vmatpush.msrb.mxu2 %v956_v39  ;;  %v1756_v39 = vld [vmem:[#allocation9 + $0x8] sm:$0xff] }
 0xbf5   :  { %1736 = vmatpush.msrb.mxu2 %v955_v40  ;;  %v1755_v40 = vld [vmem:[#allocation9] sm:$0xff] }
 0xbf7   :  { %1737 = vmatpush.msrb.mxu2 %v954_v43 }
 0xbfa   :  { %v1384_v45 = vpop.f32.mrf.mxu0 }
 0xbfb   :  { %v1544_v4 = vpop.permute.xlu1 %1543 }
 0xbfc   :  { %1564 = vmatpush.msrb.mxu3 %v1544_v4 }
 0xbfd   :  { %1914 = vmatmul.msk.f32.vlgmr.msrb.gmra.mxu3 %vm234_vm6, %v1360_v44 }
 0xc4a   :  { %v1410_v49 = vpop.f32.mrf.mxu1 }
 0xc52   :  { %v1488_v46 = vpop.f32.mrf.mxu0 }
 0xc53   :  { %1579 = vrot.lane.b32.xlu2 %v1488_v46, %s2217_s21 }
 0xc60   :  { %v1436_v47 = vpop.f32.mrf.mxu2 }
 0xc61   :  { %1571 = vrot.lane.b32.xlu0 %v1436_v47, %s2206_s6 }
 0xc62   :  { %v1514_v52 = vpop.f32.mrf.mxu1 }
 0xc75   :  { %v1462_v11 = vpop.f32.mrf.mxu3  ;;  %v1540_v17 = vpop.f32.mrf.mxu2 }
 0xc76   :  { %1587 = vrot.lane.b32.xlu0 %v1540_v17, %s2216_s20  ;;  %1573 = vrot.lane.b32.xlu2 %v1462_v11, %s2206_s6  ;;  %v952_v11 = vld [vmem:[#allocation6 + $0x118] sm:$0xff] }
 0xc7e   :  { %1581 = vrot.lane.b32.xlu0 %v1514_v52, %s2217_s21 }
 0xc80   :  { %v1566_v48 = vpop.f32.mrf.mxu3 }
 0xc81   :  { %1589 = vrot.lane.b32.xlu1 %v1566_v48, %s2216_s20 }
 0xcad   :  { %v1580_v58 = vpop.permute.xlu2 %1579 }
 0xcd0   :  { %v1574_v62 = vpop.permute.xlu2 %1573 }
 0xcd1   :  { %v1594_v0 = vsel %vm234_vm6, %v1410_v49, %v1574_v62 }
 0xcd3   :  { %v1572_v57 = vpop.permute.xlu0 %1571 }
 0xcd4   :  { %v1593_v41 = vsel %vm234_vm6, %v1384_v45, %v1572_v57  ;;  %v953_v45 = vld [vmem:[#allocation6 + $0x120] sm:$0xff] }
 0xcd5   :  { %v1595_v59 = vsel %vm771_vm7, %v1593_v41, %v1580_v58  ;;  %1738 = vmatpush.msrb.mxu2 %v953_v45  ;;  %v1686_v41 = vperm.slane %v2475_v21, 3 }
 0xcd7   :  { %1739 = vmatpush.msrb.mxu2 %v952_v11 }
 0xce8   :  { %v1588_v60 = vpop.permute.xlu0 %1587 }
 0xce9   :  { %v1597_v61 = vsel %vm774_vm8, %v1595_v59, %v1588_v60 }
 0xcea   :  { %1915 = vmatmul.msk.f32.vlgmr.msrb.gmra.mxu0 %vm124_vm0, %v1597_v61 }
 0xcf0   :  { %v1582_v63 = vpop.permute.xlu0 %1581 }
 0xcf1   :  { %v1596_v1 = vsel %vm771_vm7, %v1594_v0, %v1582_v63 }
 0xcf3   :  { %v1590_v3 = vpop.permute.xlu1 %1589 }
 0xcf4   :  { %v1598_v5 = vsel %vm774_vm8, %v1596_v1, %v1590_v3 }
 0xcf5   :  { %1916 = vmatmul.msk.f32.gmra.mxu0 %vm124_vm0, %v1598_v5 }
 0xd67   :  { %v1622_v8 = vpop.f32.mrf.mxu0 }
 0xd68   :  { %v1628_v2 = vadd.f32 %v1622_v8, %v2460_v50 }
 0xd6a   :  { %v2615_v10 = vadd.f32 %v1630_v6, %v1628_v2  ;;  %v951_v2 = vld [vmem:[#allocation6 + $0x110] sm:$0xff] }
 0xd6b   :  { %1740 = vmatpush.msrb.mxu2 %v951_v2 }
 0xd6c   :  { %v1633_v14 = vsel %vm124_vm0, %v2615_v10, 0.0 }
 0xd6d   :  { %1634 = vadd.xlane.f32.xlu2 %v1633_v14  ;;  %v950_v14 = vld [vmem:[#allocation6 + $0x108] sm:$0xff] }
 0xd6e   :  { %1741 = vmatpush.msrb.mxu2 %v950_v14 }
 0xd72   :  { %v1625_v18 = vpop.f32.mrf.mxu0 }
 0xd73   :  { %v1629_v19 = vadd.f32 %v1625_v18, %v2465_v51  ;;  %v949_v18 = vld [vmem:[#allocation6 + $0x100] sm:$0xff] }
 0xd74   :  { %1742 = vmatpush.msrb.mxu2 %v949_v18 }
 0xd75   :  { %v2620_v20 = vadd.f32 %v1630_v6, %v1629_v19  ;;  %v1689_v19 = vperm.slane %v2475_v21, 6 }
 0xd77   :  { %v1636_v22 = vsel %vm124_vm0, %v2620_v20, 0.0 }
 0xd78   :  { %1637 = vadd.xlane.f32.xlu0 %v1636_v22 }
 0xde0   :  { %v1635_v23 = vpop.xlane.xlu2 %1634 }
 0xde1   :  { %v1639_v24 = vmul.f32 %v1635_v23, %v2275_v15 }
 0xde3   :  { %v1641_v50 = vsub.f32 %v2615_v10, %v1639_v24 }
 0xde5   :  { %v1643_v7 = vmul.f32 %v1641_v50, %v1641_v50  ;;  %v1682_v57 = vmul.f32 %v1681_v54, %v1641_v50 }
 0xde7   :  { %v1645_v16 = vsel %vm124_vm0, %v1643_v7, 0.0 }
 0xde8   :  { %1646 = vadd.xlane.f32.xlu1 %v1645_v16 }
 0xdeb   :  { %v1638_v25 = vpop.xlane.xlu0 %1637 }
 0xdec   :  { %v1640_v26 = vmul.f32 %v1638_v25, %v2275_v15  ;;  %v1752_v25 = vperm.slane %v2475_v21, 7 }
 0xdee   :  { %v2629_v51 = vsub.f32 %v2620_v20, %v1640_v26 }
 0xdf0   :  { %v1644_v27 = vmul.f32 %v2629_v51, %v2629_v51  ;;  %v1683_v3 = vmul.f32 %v1681_v54, %v2629_v51 }
 0xdf2   :  { %v1648_v28 = vsel %vm124_vm0, %v1644_v27, 0.0 }
 0xdf3   :  { %1649 = vadd.xlane.f32.xlu2 %v1648_v28 }
 0xe5b   :  { %v1647_v53 = vpop.xlane.xlu1 %1646 }
 0xe5c   :  { %v1651_v31 = vmul.f32 0.032258064, %v1647_v53 }
 0xe5e   :  { %2061 = vrsqrt.f32 %v1651_v31  ;;  %vm1660_vm3 = vcmp.eq.f32.partialorder %v1651_v31, inf  ;;  %v1663_v46 = vand.u32 2147483648, %v1651_v31  ;;  %vm1662_vm4 = vcmp.eq.f32.partialorder %v1651_v31, 0.0 }
 0xe64   :  { %v2062_v32 = vpop.eup %2061 }
 0xe65   :  { %v1654_v33 = vmul.f32 %v2062_v32, %v1651_v31 }
 0xe66   :  { %v1650_v34 = vpop.xlane.xlu2 %1649 }
 0xe67   :  { %v1655_v35 = vmul.f32 %v2062_v32, %v1654_v33  ;;  %v1652_v36 = vmul.f32 0.032258064, %v1650_v34 }
 0xe69   :  { %v1656_v37 = vmul.f32 0.5, %v1655_v35  ;;  %2063 = vrsqrt.f32 %v1652_v36  ;;  %vm1672_vm5 = vcmp.eq.f32.partialorder %v1652_v36, inf  ;;  %v1675_v60 = vand.u32 2147483648, %v1652_v36 }
 0xe6a   :  { %vm1674_vm6 = vcmp.eq.f32.partialorder %v1652_v36, 0.0 }
 0xe6b   :  { %v1657_v38 = vsub.f32 1.5, %v1656_v37 }
 0xe6d   :  { %v1658_v42 = vmul.f32 %v2062_v32, %v1657_v38  ;;  %v1757_v38 = vld [vmem:[#allocation9 + $0x10] sm:$0xff] }
 0xe6f   :  { %v2064_v44 = vpop.eup %2063  ;;  %v1659_v4 = vmul.f32 %v1658_v42, %v1651_v31 }
 0xe70   :  { %v1666_v47 = vmul.f32 %v2064_v44, %v1652_v36 }
 0xe71   :  { %v1661_v49 = vsel %vm1660_vm3, %v1651_v31, %v1659_v4 }
 0xe72   :  { %v1664_v17 = vsel %vm1662_vm4, %v1663_v46, %v1661_v49  ;;  %v1667_v52 = vmul.f32 %v2064_v44, %v1666_v47 }
 0xe73   :  { %v1677_v48 = vadd.f32 1e-06, %v1664_v17 }
 0xe74   :  { %v1668_v13 = vmul.f32 0.5, %v1667_v52 }
 0xe75   :  { %2065 = vrcp.f32 %v1677_v48 }
 0xe76   :  { %v1669_v55 = vsub.f32 1.5, %v1668_v13 }
 0xe78   :  { %v1670_v56 = vmul.f32 %v2064_v44, %v1669_v55 }
 0xe7a   :  { %v1671_v58 = vmul.f32 %v1670_v56, %v1652_v36 }
 0xe7b   :  { %v2066_v59 = vpop.eup %2065 }
 0xe7c   :  { %v1684_v61 = vmul.f32 %v2066_v59, %v1682_v57  ;;  %v1673_v62 = vsel %vm1672_vm5, %v1652_v36, %v1671_v58  ;;  %v1968_v58 = vld [vmem:[#allocation9 + $0x21] ss:$0 sm:$0xff] }
 0xe7d   :  { %v1676_v63 = vsel %vm1674_vm6, %v1675_v60, %v1673_v62  ;;  %v1969_v62 = vld [vmem:[#allocation9 + $0x22] ss:$0 sm:$0xff] }
 0xe7e   :  { %v1687_v0 = vadd.f32 %v1686_v41, %v1684_v61  ;;  %v1678_v1 = vadd.f32 1e-06, %v1676_v63 }
 0xe80   :  { %1917 = vmatmul.msk.f32.vlgmr.msrb.gmra.mxu1 %vm124_vm0, %v1687_v0  ;;  %2067 = vrcp.f32 %v1678_v1 }
 0xe86   :  { %v2068_v5 = vpop.eup %2067 }
 0xe87   :  { %v1685_v6 = vmul.f32 %v2068_v5, %v1683_v3 }
 0xe89   :  { %v1688_v8 = vadd.f32 %v1686_v41, %v1685_v6 }
 0xe8b   :  { %1918 = vmatmul.msk.f32.gmra.mxu1 %vm124_vm0, %v1688_v8 }
 0xefd   :  { %v1713_v22 = vpop.f32.mrf.mxu1 }
 0xefe   :  { %v1714_v23 = vadd.f32 %v1713_v22, %v1689_v19 }
 0xf00   :  { %v1719_v24 = vmax.f32 %v1714_v23, 0.0  ;;  %v1970_v23 = vld [vmem:[#allocation9 + $0x20] ss:$0 sm:$0xff] }
 0xf02   :  { %1919 = vmatmul.msk.f32.vlgmr.msrb.gmra.mxu2 %vm899_vm13, %v1719_v24 }
 0xf08   :  { %v1716_v50 = vpop.f32.mrf.mxu1 }
 0xf09   :  { %v1717_v7 = vadd.f32 %v1716_v50, %v1689_v19 }
 0xf0b   :  { %v1720_v16 = vmax.f32 %v1717_v7, 0.0 }
 0xf0d   :  { %1920 = vmatmul.msk.f32.gmra.mxu2 %vm899_vm13, %v1720_v16 }
 0xf85   :  { %v1744_v26 = vpop.f32.mrf.mxu2 }
 0xf86   :  { %v1750_v51 = vadd.f32 %v1744_v26, %v2615_v10 }
 0xf88   :  { %v1753_v27 = vadd.f32 %v1752_v25, %v1750_v51 }
 0xf8a   :  { %v1762_v28 = vsel %vm124_vm0, %v1753_v27, 0.0 }
 0xf8b   :  { %1763 = vadd.xlane.f32.xlu0 %v1762_v28 }
 0xf90   :  { %v1747_v29 = vpop.f32.mrf.mxu2 }
 0xf91   :  { %v1751_v30 = vadd.f32 %v1747_v29, %v2620_v20  ;;  %v1758_v20 = vld [vmem:[#allocation9 + $0x18] sm:$0xff] }
 0xf92   :  { %1837 = vmatpush.msra.mxu3 %v1758_v20 }
 0xf93   :  { %v1754_v9 = vadd.f32 %v1752_v25, %v1751_v30 }
 0xf94   :  { %1838 = vmatpush.msra.mxu3 %v1757_v38 }
 0xf95   :  { %v1765_v12 = vsel %vm124_vm0, %v1754_v9, 0.0 }
 0xf96   :  { %1766 = vadd.xlane.f32.xlu1 %v1765_v12  ;;  %1839 = vmatpush.msra.mxu3 %v1756_v39 }
 0xf98   :  { %1840 = vmatpush.msra.mxu3 %v1755_v40 }
 0xffe   :  { %v1764_v53 = vpop.xlane.xlu0 %1763 }
 0xfff   :  { %v1768_v31 = vmul.f32 %v1764_v53, %v2275_v15 }
0x1001   :  { %v1770_v32 = vsub.f32 %v1753_v27, %v1768_v31 }
0x1003   :  { %v1772_v33 = vmul.f32 %v1770_v32, %v1770_v32  ;;  %v1811_v61 = vmul.f32 %v1968_v58, %v1770_v32 }
0x1005   :  { %v1774_v21 = vsel %vm124_vm0, %v1772_v33, 0.0 }
0x1006   :  { %1775 = vadd.xlane.f32.xlu2 %v1774_v21 }
0x1009   :  { %v1767_v10 = vpop.xlane.xlu1 %1766 }
0x100a   :  { %v1769_v34 = vmul.f32 %v1767_v10, %v2275_v15 }
0x100c   :  { %v1771_v35 = vsub.f32 %v1754_v9, %v1769_v34 }
0x100e   :  { %v1773_v36 = vmul.f32 %v1771_v35, %v1771_v35  ;;  %v1812_v14 = vmul.f32 %v1968_v58, %v1771_v35 }
0x1010   :  { %v1777_v37 = vsel %vm124_vm0, %v1773_v36, 0.0 }
0x1011   :  { %1778 = vadd.xlane.f32.xlu0 %v1777_v37 }
0x1079   :  { %v1776_v42 = vpop.xlane.xlu2 %1775 }
0x107a   :  { %v1780_v43 = vmul.f32 0.032258064, %v1776_v42 }
0x107c   :  { %2069 = vrsqrt.f32 %v1780_v43  ;;  %vm1789_vm7 = vcmp.eq.f32.partialorder %v1780_v43, inf  ;;  %v1792_v48 = vand.u32 2147483648, %v1780_v43  ;;  %vm1791_vm8 = vcmp.eq.f32.partialorder %v1780_v43, 0.0 }
0x1082   :  { %v2070_v44 = vpop.eup %2069 }
0x1083   :  { %v1783_v4 = vmul.f32 %v2070_v44, %v1780_v43 }
0x1084   :  { %v1779_v45 = vpop.xlane.xlu0 %1778 }
0x1085   :  { %v1784_v15 = vmul.f32 %v2070_v44, %v1783_v4  ;;  %v1781_v46 = vmul.f32 0.032258064, %v1779_v45 }
0x1087   :  { %v1785_v47 = vmul.f32 0.5, %v1784_v15  ;;  %2071 = vrsqrt.f32 %v1781_v46  ;;  %vm1801_vm9 = vcmp.eq.f32.partialorder %v1781_v46, inf  ;;  %v1804_v1 = vand.u32 2147483648, %v1781_v46 }
0x1088   :  { %vm1803_vm10 = vcmp.eq.f32.partialorder %v1781_v46, 0.0 }
0x1089   :  { %v1786_v49 = vsub.f32 1.5, %v1785_v47 }
0x108b   :  { %v1787_v11 = vmul.f32 %v2070_v44, %v1786_v49 }
0x108d   :  { %v2072_v17 = vpop.eup %2071  ;;  %v1788_v52 = vmul.f32 %v1787_v11, %v1780_v43 }
0x108e   :  { %v1795_v13 = vmul.f32 %v2072_v17, %v1781_v46 }
0x108f   :  { %v1790_v54 = vsel %vm1789_vm7, %v1780_v43, %v1788_v52 }
0x1090   :  { %v1793_v55 = vsel %vm1791_vm8, %v1792_v48, %v1790_v54  ;;  %v1796_v56 = vmul.f32 %v2072_v17, %v1795_v13 }
0x1091   :  { %v1806_v57 = vadd.f32 1e-06, %v1793_v55 }
0x1092   :  { %v1797_v41 = vmul.f32 0.5, %v1796_v56 }
0x1093   :  { %2073 = vrcp.f32 %v1806_v57 }
0x1094   :  { %v1798_v59 = vsub.f32 1.5, %v1797_v41 }
0x1096   :  { %v1799_v60 = vmul.f32 %v2072_v17, %v1798_v59 }
0x1098   :  { %v1800_v63 = vmul.f32 %v1799_v60, %v1781_v46 }
0x1099   :  { %v2074_v0 = vpop.eup %2073 }
0x109a   :  { %v1813_v3 = vmul.f32 %v2074_v0, %v1811_v61  ;;  %v1802_v5 = vsel %vm1801_vm9, %v1781_v46, %v1800_v63 }
0x109b   :  { %v1805_v6 = vsel %vm1803_vm10, %v1804_v1, %v1802_v5 }
0x109c   :  { %v1816_v8 = vadd.f32 %v1969_v62, %v1813_v3  ;;  %v1807_v2 = vadd.f32 1e-06, %v1805_v6 }
0x109e   :  { %1921 = vmatmul.msk.f32.vlgmr.msra.gmra.mxu3 %vm124_vm0, %v1816_v8  ;;  %2075 = vrcp.f32 %v1807_v2 }
0x10a4   :  { %v2076_v18 = vpop.eup %2075 }
0x10a5   :  { %v1814_v19 = vmul.f32 %v2076_v18, %v1812_v14 }
0x10a7   :  { %v1817_v22 = vadd.f32 %v1969_v62, %v1814_v19 }
0x10a9   :  { %1922 = vmatmul.msk.f32.gmra.mxu3 %vm124_vm0, %v1817_v22 }
0x1121   :  { %v1842_v24 = vpop.f32.mrf.mxu3 }
0x1122   :  { %v1843_v50 = vadd.f32 %v1970_v23, %v1842_v24 }
0x1124   :  { %1848 = vst [vmem:[%s2664_s5] sm:$0xff] %v1843_v50 }
0x112c   :  { %v1845_v7 = vpop.f32.mrf.mxu3 }
0x112d   :  { %v1846_v16 = vadd.f32 %v1970_v23, %v1845_v7 }
0x112f   :  { %1849 = vst [vmem:[%s2664_s5 + $0x8] sm:$0xff] %v1846_v16 }
0x1130   :  { %1854 = vsyncpa [#allocation3], 1 }
0x1131   :  { %1855 = vsyncpa [#allocation5], 1 }
0x1132   :  { %1856 = vsyncpa [#allocation8], 1 }

</bundles_post_ra>
